<compile_context>
chip_gen: v7x
topology: tpu7x:2x2x1
jax: 0.10.0
libtpu: 0.0.40
codegen_flags: <defaults>
</compile_context>

<pallas_src>
import jax
import jax.numpy as jnp
import numpy as np
from jax import lax
from jax.experimental import pallas as pl
from jax.experimental.pallas import tpu as pltpu

C1, C2, K = 10, 20, 5       # conv channel counts / kernel size
PW1, PW2 = 12, 4            # pooled spatial sizes after stage 1 / stage 2
NCLS = 50                   # fc1 width actually used by forward() (fc2 unused)
LANES = 128                 # lane-dense padded width for all stages


# ------------------------------ fused kernel --------------------------------

def _fused_forward_kernel(x1_ref, b1_ref, b2_ref, gfc_ref,
                          c1b_ref, c2b_ref, fcb_ref, o_ref):
    f32, bf16 = jnp.float32, jnp.bfloat16
    B = o_ref.shape[0]                     # images per grid step (mult of 8)

    # ---- stage 1: conv1(5x5, 1->10) + maxpool2 + ReLU.  M = 6*B -----------
    # x1_ref[0, 2p+a][i*B+n, kh*28+col] = img[n, 4i + 2p + a + kh, col]
    # (kh already folded into K on the host), so one dot per (p, a, b) corner.
    p1 = []                                # p1[p]: (6B, 128) bf16, row = i*B+n
    for p in range(2):
        y = None
        for ar in range(2):                             # pool corner, rows
            slab = x1_ref[0, 2 * p + ar]                # (6B, 140) bf16
            for ac in range(2):                         # pool corner, cols
                acc = jnp.dot(slab, b1_ref[ac],
                              preferred_element_type=f32)       # (6B, 128)
                y = acc if y is None else jnp.maximum(y, acc)   # running max
        # per-channel conv bias commutes with the 2x2 max -> add once after.
        p1.append(jnp.maximum(y + c1b_ref[...], 0.0).astype(bf16))

    # ---- stage 2: conv2(5x5, 10->20) + maxpool2 + ReLU.  M = 4*B ----------
    # kh folded in-kernel: lane-concat 5 aligned (4B, 128) windows of p1.
    h2 = None
    for ar in range(2):
        slab = jnp.concatenate(
            [p1[(ar + kh) % 2][((ar + kh) // 2) * B:((ar + kh) // 2 + 4) * B, :]
             for kh in range(K)], axis=-1)              # (4B, 640) bf16
        for ac in range(2):
            acc = jnp.dot(slab, b2_ref[ac],
                          preferred_element_type=f32)            # (4B, 128)
            h2 = acc if h2 is None else jnp.maximum(h2, acc)
    h2 = jnp.maximum(h2 + c2b_ref[...], 0.0).astype(bf16)        # (4B, 128)

    # ---- fc1 + ReLU + (eval) dropout + log_softmax.  M = B ----------------
    flat = jnp.concatenate([h2[h * B:(h + 1) * B, :] for h in range(PW2)],
                           axis=-1)                              # (B, 512)
    y = jnp.dot(flat, gfc_ref[...], preferred_element_type=f32) + fcb_ref[...]
    y = jnp.maximum(y, 0.0)                                      # (B, 128)
    # TODO(synk): F.dropout(x, training=self.training) is identity in eval
    # mode; training-mode dropout would need pltpu.prng_seed/prng_random_bits.
    col = lax.broadcasted_iota(jnp.int32, y.shape, 1)
    z = jnp.where(col < NCLS, y, -1e30)    # mask padded lanes out of softmax
    m = jnp.max(z, axis=-1, keepdims=True)
    lse = jnp.log(jnp.sum(jnp.exp(z - m), axis=-1, keepdims=True))
    o_ref[...] = z - m - lse               # (B, 128) lane-dense store


# --------------------- host-side weight layout plumbing ---------------------

def _stage1_weight(w1):
    """B1[b, kh*28 + wi, pw*C1 + co] = w1[co, 0, kh, wi - (2*pw + b)], so that
    (kh-folded row slab) @ B1[b] gives conv1 output at columns {2*pw + b},
    channels packed into lanes (padded to 128)."""
    w1 = np.asarray(w1, np.float32)
    B1 = np.zeros((2, K * 28, LANES), np.float32)
    for b in range(2):
        for kh in range(K):
            for pw in range(PW1):
                for kw in range(K):
                    wi = 2 * pw + b + kw
                    B1[b, kh * 28 + wi, pw * C1:(pw + 1) * C1] = w1[:, 0, kh, kw]
    return B1


def _stage2_weight(w2):
    """B2[b, kh*128 + wi*C1 + ci, pw*C2 + co] = w2[co, ci, kh, wi - (2*pw+b)];
    rows match the kernel's kh-folded, 128-lane-padded p1 layout."""
    w2 = np.asarray(w2, np.float32)
    B2 = np.zeros((2, K * LANES, LANES), np.float32)
    for b in range(2):
        for kh in range(K):
            for pw in range(PW2):
                for kw in range(K):
                    wi = 2 * pw + b + kw
                    for ci in range(C1):
                        B2[b, kh * LANES + wi * C1 + ci,
                           pw * C2:(pw + 1) * C2] = w2[:, ci, kh, kw]
    return B2


def _fc1_weight(w_fc, b_fc):
    """fc1 weight flattened to a single (4*128, 128) matrix matching the
    kernel's lane-concatenated (h, w*C2 + c) activation layout (PyTorch
    flattens NCHW: feature = c*16 + h*4 + w)."""
    w_fc = np.asarray(w_fc, np.float32)                  # (50, 320)
    G = np.zeros((PW2 * LANES, LANES), np.float32)
    for h in range(PW2):
        for w in range(PW2):
            for c in range(C2):
                G[h * LANES + w * C2 + c, :NCLS] = \
                    w_fc[:, c * PW2 * PW2 + h * PW2 + w]
    fb = np.zeros((1, LANES), np.float32)
    fb[0, :NCLS] = np.asarray(b_fc, np.float32)
    return G, fb


def preprocess_params(p):
    """One-time host-side repack of the PyTorch-layout parameters."""
    B1 = _stage1_weight(p["conv1_w"])                    # (2, 140, 128)
    B2 = _stage2_weight(p["conv2_w"])                    # (2, 640, 128)
    Gfc, fcb = _fc1_weight(p["fc1_w"], p["fc1_b"])       # (512, 128), (1, 128)
    c1b = np.zeros((1, LANES), np.float32)
    c1b[0, :PW1 * C1] = np.tile(np.asarray(p["conv1_b"], np.float32), PW1)
    c2b = np.zeros((1, LANES), np.float32)
    c2b[0, :PW2 * C2] = np.tile(np.asarray(p["conv2_b"], np.float32), PW2)
    return {
        "B1": jnp.asarray(B1, jnp.bfloat16),
        "B2": jnp.asarray(B2, jnp.bfloat16),
        "Gfc": jnp.asarray(Gfc, jnp.bfloat16),
        "c1b": jnp.asarray(c1b, jnp.float32),
        "c2b": jnp.asarray(c2b, jnp.float32),
        "fcb": jnp.asarray(fcb, jnp.float32),
    }


# ------------------------------- forward ------------------------------------

def _choose_bblk(n):
    """Biggest batch block (multiple of 8) that keeps >= 2 grid steps when
    possible (v7x has 2 TensorCores to shard the 'parallel' grid axis over)."""
    for b in (32, 16, 8):
        if n >= 2 * b:
            return b
    return 8


def mysub_network_forward(x, prep):
    """x: (N, 1, 28, 28) f32 -> (N, 50) log-probs, single fused pallas_call."""
    N = x.shape[0]
    B = _choose_bblk(N)
    n_blk = -(-N // B)
    n_pad = n_blk * B

    xs = x.reshape(N, 28, 28).astype(jnp.float32)
    if n_pad != N:
        xs = jnp.concatenate(
            [xs, jnp.zeros((n_pad - N, 28, 28), xs.dtype)], axis=0)

    # Host-side im2row over kh ONLY (conv kh folded into matmul K), shipped in
    # bf16: X1[g, 2p+a, i*B+n, kh*28+col] = img[g*B+n, 4i + 2p + a + kh, col].
    idx = (4 * np.arange(6)[None, :, None]
           + np.arange(4)[:, None, None]
           + np.arange(K)[None, None, :])               # (4, 6, 5) image rows
    xg = xs[:, idx, :]                                   # (n_pad, 4, 6, 5, 28)
    xg = xg.reshape(n_blk, B, 4, 6, K * 28).transpose(0, 2, 3, 1, 4)
    x1 = xg.reshape(n_blk, 4, 6 * B, K * 28).astype(jnp.bfloat16)

    out = pl.pallas_call(
        _fused_forward_kernel,
        out_shape=jax.ShapeDtypeStruct((n_pad, LANES), jnp.float32),
        grid=(n_blk,),
        in_specs=[
            pl.BlockSpec((1, 4, 6 * B, K * 28), lambda g: (g, 0, 0, 0)),
            pl.BlockSpec((2, K * 28, LANES), lambda g: (0, 0, 0)),
            pl.BlockSpec((2, K * LANES, LANES), lambda g: (0, 0, 0)),
            pl.BlockSpec((PW2 * LANES, LANES), lambda g: (0, 0)),
            pl.BlockSpec((1, LANES), lambda g: (0, 0)),
            pl.BlockSpec((1, LANES), lambda g: (0, 0)),
            pl.BlockSpec((1, LANES), lambda g: (0, 0)),
        ],
        out_specs=pl.BlockSpec((B, LANES), lambda g: (g, 0)),
        compiler_params=pltpu.CompilerParams(
            dimension_semantics=("parallel",),
            vmem_limit_bytes=32 * 1024 * 1024,
        ),
    )(x1, prep["B1"], prep["B2"], prep["Gfc"],
      prep["c1b"], prep["c2b"], prep["fcb"])
    return out[:N, :NCLS]


# ------------------------ deterministic parameters --------------------------

def init_params(key):
    ks = jax.random.split(key, 8)

    def u(k, shape, fan_in):
        bound = 1.0 / np.sqrt(fan_in)
        return jax.random.uniform(k, shape, jnp.float32, -bound, bound)

    return {
        "conv1_w": u(ks[0], (10, 1, 5, 5), 1 * 5 * 5),
        "conv1_b": u(ks[1], (10,), 1 * 5 * 5),
        "conv2_w": u(ks[2], (20, 10, 5, 5), 10 * 5 * 5),
        "conv2_b": u(ks[3], (20,), 10 * 5 * 5),
        "fc1_w": u(ks[4], (50, 320), 320),
        "fc1_b": u(ks[5], (50,), 320),
        # fc2 / conv2_drop exist in __init__ but are never used by forward();
        # initialized only for structural fidelity.
        "fc2_w": u(ks[6], (10, 50), 50),
        "fc2_b": u(ks[7], (10,), 50),
    }


# --------------------------- pure-JAX reference -----------------------------

def reference_forward(x, p):
    def conv(x, w, b):
        y = lax.conv_general_dilated(
            x, w, (1, 1), "VALID", dimension_numbers=("NCHW", "OIHW", "NCHW"))
        return y + b.reshape(1, -1, 1, 1)

    def pool2(x):
        N, C, H, W = x.shape
        return x.reshape(N, C, H // 2, 2, W // 2, 2).max(axis=(3, 5))

    x = jax.nn.relu(pool2(conv(x, p["conv1_w"], p["conv1_b"])))
    x = jax.nn.relu(pool2(conv(x, p["conv2_w"], p["conv2_b"])))
    x = x.reshape(x.shape[0], -1)
    x = jax.nn.relu(x @ p["fc1_w"].T + p["fc1_b"])
    return jax.nn.log_softmax(x, axis=1)


if __name__ == "__main__":
    key = jax.random.PRNGKey(0)
    kx, kp = jax.random.split(key)
    params = init_params(kp)
    prep = preprocess_params(params)

    fwd = jax.jit(mysub_network_forward)

    # N=2: single (padded) grid step; N=20: multiple grid steps + batch padding.
    for n in (2, 20):
        x = jax.random.normal(jax.random.fold_in(kx, n),
                              (n, 1, 28, 28), jnp.float32)
        out = jax.block_until_ready(fwd(x, prep))
        ref = reference_forward(x, params)
        # bf16 matmul operands with f32 accumulation -> compare loosely vs f32.
        np.testing.assert_allclose(np.asarray(out), np.asarray(ref),
                                   atol=1e-1, rtol=5e-2)
    print("KERNEL_OK")
</pallas_src>

<mosaic_0001>
module attributes {stable_mosaic.version = 11 : i64} {
  func.func @_fused_forward_kernel(%arg0: i32, %arg1: memref<1x4x48x140xbf16, #tpu.memory_space<vmem>>, %arg2: memref<2x140x128xbf16, #tpu.memory_space<vmem>>, %arg3: memref<2x640x128xbf16, #tpu.memory_space<vmem>>, %arg4: memref<512x128xbf16, #tpu.memory_space<vmem>>, %arg5: memref<1x128xf32, #tpu.memory_space<vmem>>, %arg6: memref<1x128xf32, #tpu.memory_space<vmem>>, %arg7: memref<1x128xf32, #tpu.memory_space<vmem>>, %arg8: memref<8x128xf32, #tpu.memory_space<vmem>>) attributes {dimension_semantics = [#tpu.dimension_semantics<parallel>], iteration_bounds = array<i64: 1>, scalar_prefetch = 0 : i64, scratch_operands = 0 : i64, tpu.core_type = #tpu.core_type<tc>, window_params = [{transform_indices = @transform_0, window_bounds = array<i64: 1, 4, 48, 140>}, {pipeline_mode = #tpu.pipeline_mode<synchronous>, transform_indices = @transform_1, window_bounds = array<i64: 2, 140, 128>}, {pipeline_mode = #tpu.pipeline_mode<synchronous>, transform_indices = @transform_2, window_bounds = array<i64: 2, 640, 128>}, {pipeline_mode = #tpu.pipeline_mode<synchronous>, transform_indices = @transform_3, window_bounds = array<i64: 512, 128>}, {pipeline_mode = #tpu.pipeline_mode<synchronous>, transform_indices = @transform_4, window_bounds = array<i64: 1, 128>}, {pipeline_mode = #tpu.pipeline_mode<synchronous>, transform_indices = @transform_5, window_bounds = array<i64: 1, 128>}, {pipeline_mode = #tpu.pipeline_mode<synchronous>, transform_indices = @transform_6, window_bounds = array<i64: 1, 128>}, {transform_indices = @transform_7, window_bounds = array<i64: 8, 128>}]} {
    %c0 = arith.constant 0 : index
    %c0_0 = arith.constant 0 : index
    %c0_1 = arith.constant 0 : index
    %c0_2 = arith.constant 0 : index
    %0 = vector.load %arg1[%c0, %c0_0, %c0_1, %c0_2] : memref<1x4x48x140xbf16, #tpu.memory_space<vmem>>, vector<1x1x48x140xbf16>
    %1 = vector.shape_cast %0 : vector<1x1x48x140xbf16> to vector<48x140xbf16>
    %c0_3 = arith.constant 0 : index
    %c0_4 = arith.constant 0 : index
    %c0_5 = arith.constant 0 : index
    %2 = vector.load %arg2[%c0_3, %c0_4, %c0_5] : memref<2x140x128xbf16, #tpu.memory_space<vmem>>, vector<1x140x128xbf16>
    %3 = vector.shape_cast %2 : vector<1x140x128xbf16> to vector<140x128xbf16>
    %cst = arith.constant dense<0.000000e+00> : vector<48x128xf32>
    %4 = tpu.matmul %1, %3, %cst {dimension_numbers = #tpu.dot_dimension_numbers<[1], [0], [0], [1], [0, 0, 1, 1], [], []>} : vector<48x140xbf16>, vector<140x128xbf16>, vector<48x128xf32> -> vector<48x128xf32>
    %c1 = arith.constant 1 : index
    %c0_6 = arith.constant 0 : index
    %c0_7 = arith.constant 0 : index
    %5 = vector.load %arg2[%c1, %c0_6, %c0_7] : memref<2x140x128xbf16, #tpu.memory_space<vmem>>, vector<1x140x128xbf16>
    %6 = vector.shape_cast %5 : vector<1x140x128xbf16> to vector<140x128xbf16>
    %cst_8 = arith.constant dense<0.000000e+00> : vector<48x128xf32>
    %7 = tpu.matmul %1, %6, %cst_8 {dimension_numbers = #tpu.dot_dimension_numbers<[1], [0], [0], [1], [0, 0, 1, 1], [], []>} : vector<48x140xbf16>, vector<140x128xbf16>, vector<48x128xf32> -> vector<48x128xf32>
    %8 = arith.maximumf %4, %7 : vector<48x128xf32>
    %c0_9 = arith.constant 0 : index
    %c1_10 = arith.constant 1 : index
    %c0_11 = arith.constant 0 : index
    %c0_12 = arith.constant 0 : index
    %9 = vector.load %arg1[%c0_9, %c1_10, %c0_11, %c0_12] : memref<1x4x48x140xbf16, #tpu.memory_space<vmem>>, vector<1x1x48x140xbf16>
    %10 = vector.shape_cast %9 : vector<1x1x48x140xbf16> to vector<48x140xbf16>
    %c0_13 = arith.constant 0 : index
    %c0_14 = arith.constant 0 : index
    %c0_15 = arith.constant 0 : index
    %11 = vector.load %arg2[%c0_13, %c0_14, %c0_15] : memref<2x140x128xbf16, #tpu.memory_space<vmem>>, vector<1x140x128xbf16>
    %12 = vector.shape_cast %11 : vector<1x140x128xbf16> to vector<140x128xbf16>
    %cst_16 = arith.constant dense<0.000000e+00> : vector<48x128xf32>
    %13 = tpu.matmul %10, %12, %cst_16 {dimension_numbers = #tpu.dot_dimension_numbers<[1], [0], [0], [1], [0, 0, 1, 1], [], []>} : vector<48x140xbf16>, vector<140x128xbf16>, vector<48x128xf32> -> vector<48x128xf32>
    %14 = arith.maximumf %8, %13 : vector<48x128xf32>
    %c1_17 = arith.constant 1 : index
    %c0_18 = arith.constant 0 : index
    %c0_19 = arith.constant 0 : index
    %15 = vector.load %arg2[%c1_17, %c0_18, %c0_19] : memref<2x140x128xbf16, #tpu.memory_space<vmem>>, vector<1x140x128xbf16>
    %16 = vector.shape_cast %15 : vector<1x140x128xbf16> to vector<140x128xbf16>
    %cst_20 = arith.constant dense<0.000000e+00> : vector<48x128xf32>
    %17 = tpu.matmul %10, %16, %cst_20 {dimension_numbers = #tpu.dot_dimension_numbers<[1], [0], [0], [1], [0, 0, 1, 1], [], []>} : vector<48x140xbf16>, vector<140x128xbf16>, vector<48x128xf32> -> vector<48x128xf32>
    %18 = arith.maximumf %14, %17 : vector<48x128xf32>
    %c0_21 = arith.constant 0 : index
    %c0_22 = arith.constant 0 : index
    %19 = vector.load %arg5[%c0_21, %c0_22] : memref<1x128xf32, #tpu.memory_space<vmem>>, vector<1x128xf32>
    %20 = vector.broadcast %19 : vector<1x128xf32> to vector<48x128xf32>
    %21 = arith.addf %18, %20 : vector<48x128xf32>
    %cst_23 = arith.constant 0.000000e+00 : f32
    %22 = vector.broadcast %cst_23 : f32 to vector<48x128xf32>
    %23 = arith.maximumf %21, %22 : vector<48x128xf32>
    %24 = arith.truncf %23 : vector<48x128xf32> to vector<48x128xbf16>
    %c0_24 = arith.constant 0 : index
    %c2 = arith.constant 2 : index
    %c0_25 = arith.constant 0 : index
    %c0_26 = arith.constant 0 : index
    %25 = vector.load %arg1[%c0_24, %c2, %c0_25, %c0_26] : memref<1x4x48x140xbf16, #tpu.memory_space<vmem>>, vector<1x1x48x140xbf16>
    %26 = vector.shape_cast %25 : vector<1x1x48x140xbf16> to vector<48x140xbf16>
    %c0_27 = arith.constant 0 : index
    %c0_28 = arith.constant 0 : index
    %c0_29 = arith.constant 0 : index
    %27 = vector.load %arg2[%c0_27, %c0_28, %c0_29] : memref<2x140x128xbf16, #tpu.memory_space<vmem>>, vector<1x140x128xbf16>
    %28 = vector.shape_cast %27 : vector<1x140x128xbf16> to vector<140x128xbf16>
    %cst_30 = arith.constant dense<0.000000e+00> : vector<48x128xf32>
    %29 = tpu.matmul %26, %28, %cst_30 {dimension_numbers = #tpu.dot_dimension_numbers<[1], [0], [0], [1], [0, 0, 1, 1], [], []>} : vector<48x140xbf16>, vector<140x128xbf16>, vector<48x128xf32> -> vector<48x128xf32>
    %c1_31 = arith.constant 1 : index
    %c0_32 = arith.constant 0 : index
    %c0_33 = arith.constant 0 : index
    %30 = vector.load %arg2[%c1_31, %c0_32, %c0_33] : memref<2x140x128xbf16, #tpu.memory_space<vmem>>, vector<1x140x128xbf16>
    %31 = vector.shape_cast %30 : vector<1x140x128xbf16> to vector<140x128xbf16>
    %cst_34 = arith.constant dense<0.000000e+00> : vector<48x128xf32>
    %32 = tpu.matmul %26, %31, %cst_34 {dimension_numbers = #tpu.dot_dimension_numbers<[1], [0], [0], [1], [0, 0, 1, 1], [], []>} : vector<48x140xbf16>, vector<140x128xbf16>, vector<48x128xf32> -> vector<48x128xf32>
    %33 = arith.maximumf %29, %32 : vector<48x128xf32>
    %c0_35 = arith.constant 0 : index
    %c3 = arith.constant 3 : index
    %c0_36 = arith.constant 0 : index
    %c0_37 = arith.constant 0 : index
    %34 = vector.load %arg1[%c0_35, %c3, %c0_36, %c0_37] : memref<1x4x48x140xbf16, #tpu.memory_space<vmem>>, vector<1x1x48x140xbf16>
    %35 = vector.shape_cast %34 : vector<1x1x48x140xbf16> to vector<48x140xbf16>
    %c0_38 = arith.constant 0 : index
    %c0_39 = arith.constant 0 : index
    %c0_40 = arith.constant 0 : index
    %36 = vector.load %arg2[%c0_38, %c0_39, %c0_40] : memref<2x140x128xbf16, #tpu.memory_space<vmem>>, vector<1x140x128xbf16>
    %37 = vector.shape_cast %36 : vector<1x140x128xbf16> to vector<140x128xbf16>
    %cst_41 = arith.constant dense<0.000000e+00> : vector<48x128xf32>
    %38 = tpu.matmul %35, %37, %cst_41 {dimension_numbers = #tpu.dot_dimension_numbers<[1], [0], [0], [1], [0, 0, 1, 1], [], []>} : vector<48x140xbf16>, vector<140x128xbf16>, vector<48x128xf32> -> vector<48x128xf32>
    %39 = arith.maximumf %33, %38 : vector<48x128xf32>
    %c1_42 = arith.constant 1 : index
    %c0_43 = arith.constant 0 : index
    %c0_44 = arith.constant 0 : index
    %40 = vector.load %arg2[%c1_42, %c0_43, %c0_44] : memref<2x140x128xbf16, #tpu.memory_space<vmem>>, vector<1x140x128xbf16>
    %41 = vector.shape_cast %40 : vector<1x140x128xbf16> to vector<140x128xbf16>
    %cst_45 = arith.constant dense<0.000000e+00> : vector<48x128xf32>
    %42 = tpu.matmul %35, %41, %cst_45 {dimension_numbers = #tpu.dot_dimension_numbers<[1], [0], [0], [1], [0, 0, 1, 1], [], []>} : vector<48x140xbf16>, vector<140x128xbf16>, vector<48x128xf32> -> vector<48x128xf32>
    %43 = arith.maximumf %39, %42 : vector<48x128xf32>
    %c0_46 = arith.constant 0 : index
    %c0_47 = arith.constant 0 : index
    %44 = vector.load %arg5[%c0_46, %c0_47] : memref<1x128xf32, #tpu.memory_space<vmem>>, vector<1x128xf32>
    %45 = vector.broadcast %44 : vector<1x128xf32> to vector<48x128xf32>
    %46 = arith.addf %43, %45 : vector<48x128xf32>
    %cst_48 = arith.constant 0.000000e+00 : f32
    %47 = vector.broadcast %cst_48 : f32 to vector<48x128xf32>
    %48 = arith.maximumf %46, %47 : vector<48x128xf32>
    %49 = arith.truncf %48 : vector<48x128xf32> to vector<48x128xbf16>
    %50 = vector.extract_strided_slice %24 {offsets = [0, 0], sizes = [32, 128], strides = [1, 1]} : vector<48x128xbf16> to vector<32x128xbf16>
    %51 = vector.extract_strided_slice %49 {offsets = [0, 0], sizes = [32, 128], strides = [1, 1]} : vector<48x128xbf16> to vector<32x128xbf16>
    %52 = vector.extract_strided_slice %24 {offsets = [8, 0], sizes = [32, 128], strides = [1, 1]} : vector<48x128xbf16> to vector<32x128xbf16>
    %53 = vector.extract_strided_slice %49 {offsets = [8, 0], sizes = [32, 128], strides = [1, 1]} : vector<48x128xbf16> to vector<32x128xbf16>
    %54 = vector.extract_strided_slice %24 {offsets = [16, 0], sizes = [32, 128], strides = [1, 1]} : vector<48x128xbf16> to vector<32x128xbf16>
    %55 = tpu.concatenate %50, %51, %52, %53, %54 in 1 : vector<32x128xbf16>, vector<32x128xbf16>, vector<32x128xbf16>, vector<32x128xbf16>, vector<32x128xbf16> -> vector<32x640xbf16>
    %c0_49 = arith.constant 0 : index
    %c0_50 = arith.constant 0 : index
    %c0_51 = arith.constant 0 : index
    %56 = vector.load %arg3[%c0_49, %c0_50, %c0_51] : memref<2x640x128xbf16, #tpu.memory_space<vmem>>, vector<1x640x128xbf16>
    %57 = vector.shape_cast %56 : vector<1x640x128xbf16> to vector<640x128xbf16>
    %cst_52 = arith.constant dense<0.000000e+00> : vector<32x128xf32>
    %58 = tpu.matmul %55, %57, %cst_52 {dimension_numbers = #tpu.dot_dimension_numbers<[1], [0], [0], [1], [0, 0, 1, 1], [], []>} : vector<32x640xbf16>, vector<640x128xbf16>, vector<32x128xf32> -> vector<32x128xf32>
    %c1_53 = arith.constant 1 : index
    %c0_54 = arith.constant 0 : index
    %c0_55 = arith.constant 0 : index
    %59 = vector.load %arg3[%c1_53, %c0_54, %c0_55] : memref<2x640x128xbf16, #tpu.memory_space<vmem>>, vector<1x640x128xbf16>
    %60 = vector.shape_cast %59 : vector<1x640x128xbf16> to vector<640x128xbf16>
    %cst_56 = arith.constant dense<0.000000e+00> : vector<32x128xf32>
    %61 = tpu.matmul %55, %60, %cst_56 {dimension_numbers = #tpu.dot_dimension_numbers<[1], [0], [0], [1], [0, 0, 1, 1], [], []>} : vector<32x640xbf16>, vector<640x128xbf16>, vector<32x128xf32> -> vector<32x128xf32>
    %62 = arith.maximumf %58, %61 : vector<32x128xf32>
    %63 = vector.extract_strided_slice %49 {offsets = [0, 0], sizes = [32, 128], strides = [1, 1]} : vector<48x128xbf16> to vector<32x128xbf16>
    %64 = vector.extract_strided_slice %24 {offsets = [8, 0], sizes = [32, 128], strides = [1, 1]} : vector<48x128xbf16> to vector<32x128xbf16>
    %65 = vector.extract_strided_slice %49 {offsets = [8, 0], sizes = [32, 128], strides = [1, 1]} : vector<48x128xbf16> to vector<32x128xbf16>
    %66 = vector.extract_strided_slice %24 {offsets = [16, 0], sizes = [32, 128], strides = [1, 1]} : vector<48x128xbf16> to vector<32x128xbf16>
    %67 = vector.extract_strided_slice %49 {offsets = [16, 0], sizes = [32, 128], strides = [1, 1]} : vector<48x128xbf16> to vector<32x128xbf16>
    %68 = tpu.concatenate %63, %64, %65, %66, %67 in 1 : vector<32x128xbf16>, vector<32x128xbf16>, vector<32x128xbf16>, vector<32x128xbf16>, vector<32x128xbf16> -> vector<32x640xbf16>
    %c0_57 = arith.constant 0 : index
    %c0_58 = arith.constant 0 : index
    %c0_59 = arith.constant 0 : index
    %69 = vector.load %arg3[%c0_57, %c0_58, %c0_59] : memref<2x640x128xbf16, #tpu.memory_space<vmem>>, vector<1x640x128xbf16>
    %70 = vector.shape_cast %69 : vector<1x640x128xbf16> to vector<640x128xbf16>
    %cst_60 = arith.constant dense<0.000000e+00> : vector<32x128xf32>
    %71 = tpu.matmul %68, %70, %cst_60 {dimension_numbers = #tpu.dot_dimension_numbers<[1], [0], [0], [1], [0, 0, 1, 1], [], []>} : vector<32x640xbf16>, vector<640x128xbf16>, vector<32x128xf32> -> vector<32x128xf32>
    %72 = arith.maximumf %62, %71 : vector<32x128xf32>
    %c1_61 = arith.constant 1 : index
    %c0_62 = arith.constant 0 : index
    %c0_63 = arith.constant 0 : index
    %73 = vector.load %arg3[%c1_61, %c0_62, %c0_63] : memref<2x640x128xbf16, #tpu.memory_space<vmem>>, vector<1x640x128xbf16>
    %74 = vector.shape_cast %73 : vector<1x640x128xbf16> to vector<640x128xbf16>
    %cst_64 = arith.constant dense<0.000000e+00> : vector<32x128xf32>
    %75 = tpu.matmul %68, %74, %cst_64 {dimension_numbers = #tpu.dot_dimension_numbers<[1], [0], [0], [1], [0, 0, 1, 1], [], []>} : vector<32x640xbf16>, vector<640x128xbf16>, vector<32x128xf32> -> vector<32x128xf32>
    %76 = arith.maximumf %72, %75 : vector<32x128xf32>
    %c0_65 = arith.constant 0 : index
    %c0_66 = arith.constant 0 : index
    %77 = vector.load %arg6[%c0_65, %c0_66] : memref<1x128xf32, #tpu.memory_space<vmem>>, vector<1x128xf32>
    %78 = vector.broadcast %77 : vector<1x128xf32> to vector<32x128xf32>
    %79 = arith.addf %76, %78 : vector<32x128xf32>
    %cst_67 = arith.constant 0.000000e+00 : f32
    %80 = vector.broadcast %cst_67 : f32 to vector<32x128xf32>
    %81 = arith.maximumf %79, %80 : vector<32x128xf32>
    %82 = arith.truncf %81 : vector<32x128xf32> to vector<32x128xbf16>
    %83 = vector.extract_strided_slice %82 {offsets = [0, 0], sizes = [8, 128], strides = [1, 1]} : vector<32x128xbf16> to vector<8x128xbf16>
    %84 = vector.extract_strided_slice %82 {offsets = [8, 0], sizes = [8, 128], strides = [1, 1]} : vector<32x128xbf16> to vector<8x128xbf16>
    %85 = vector.extract_strided_slice %82 {offsets = [16, 0], sizes = [8, 128], strides = [1, 1]} : vector<32x128xbf16> to vector<8x128xbf16>
    %86 = vector.extract_strided_slice %82 {offsets = [24, 0], sizes = [8, 128], strides = [1, 1]} : vector<32x128xbf16> to vector<8x128xbf16>
    %87 = tpu.concatenate %83, %84, %85, %86 in 1 : vector<8x128xbf16>, vector<8x128xbf16>, vector<8x128xbf16>, vector<8x128xbf16> -> vector<8x512xbf16>
    %c0_68 = arith.constant 0 : index
    %c0_69 = arith.constant 0 : index
    %88 = vector.load %arg4[%c0_68, %c0_69] : memref<512x128xbf16, #tpu.memory_space<vmem>>, vector<512x128xbf16>
    %cst_70 = arith.constant dense<0.000000e+00> : vector<8x128xf32>
    %89 = tpu.matmul %87, %88, %cst_70 {dimension_numbers = #tpu.dot_dimension_numbers<[1], [0], [0], [1], [0, 0, 1, 1], [], []>} : vector<8x512xbf16>, vector<512x128xbf16>, vector<8x128xf32> -> vector<8x128xf32>
    %c0_71 = arith.constant 0 : index
    %c0_72 = arith.constant 0 : index
    %90 = vector.load %arg7[%c0_71, %c0_72] : memref<1x128xf32, #tpu.memory_space<vmem>>, vector<1x128xf32>
    %91 = vector.broadcast %90 : vector<1x128xf32> to vector<8x128xf32>
    %92 = arith.addf %89, %91 : vector<8x128xf32>
    %cst_73 = arith.constant 0.000000e+00 : f32
    %93 = vector.broadcast %cst_73 : f32 to vector<8x128xf32>
    %94 = arith.maximumf %92, %93 : vector<8x128xf32>
    %95 = tpu.iota {dimensions = array<i32: 1>} : vector<8x128xi32>
    %c50_i32 = arith.constant 50 : i32
    %96 = vector.broadcast %c50_i32 : i32 to vector<8x128xi32>
    %97 = arith.cmpi slt, %95, %96 : vector<8x128xi32>
    %cst_74 = arith.constant -1.000000e+30 : f32
    %98 = vector.broadcast %cst_74 : f32 to vector<8x128xf32>
    %99 = arith.select %97, %94, %98 : vector<8x128xi1>, vector<8x128xf32>
    %cst_75 = arith.constant dense<0xFF800000> : vector<8xf32>
    %100 = vector.multi_reduction <maximumf>, %99, %cst_75 [1] : vector<8x128xf32> to vector<8xf32>
    %101 = vector.shape_cast %100 : vector<8xf32> to vector<8x1xf32>
    %102 = vector.broadcast %101 : vector<8x1xf32> to vector<8x128xf32>
    %103 = arith.subf %99, %102 : vector<8x128xf32>
    %104 = math.exp %103 : vector<8x128xf32>
    %cst_76 = arith.constant dense<0.000000e+00> : vector<8xf32>
    %105 = vector.multi_reduction <add>, %104, %cst_76 [1] : vector<8x128xf32> to vector<8xf32>
    %106 = vector.shape_cast %105 : vector<8xf32> to vector<8x1xf32>
    %107 = math.log %106 : vector<8x1xf32>
    %108 = vector.broadcast %101 : vector<8x1xf32> to vector<8x128xf32>
    %109 = arith.subf %99, %108 : vector<8x128xf32>
    %110 = vector.broadcast %107 : vector<8x1xf32> to vector<8x128xf32>
    %111 = arith.subf %109, %110 : vector<8x128xf32>
    %c0_77 = arith.constant 0 : index
    %c0_78 = arith.constant 0 : index
    %112 = vector.load %arg8[%c0_77, %c0_78] : memref<8x128xf32, #tpu.memory_space<vmem>>, vector<8x128xf32>
    tpu.vector_store %arg8[%c0_77, %c0_78], %111 {strides = array<i32>} : memref<8x128xf32, #tpu.memory_space<vmem>>, vector<8x128xf32>,
    return
  }
  func.func @transform_0(%arg0: i32) -> (i32, i32, i32, i32) {
    %c0_i32 = arith.constant 0 : i32
    %c0_i32_0 = arith.constant 0 : i32
    %c0_i32_1 = arith.constant 0 : i32
    %c0_i32_2 = arith.constant 0 : i32
    return %arg0, %c0_i32, %c0_i32_0, %c0_i32_1 : i32, i32, i32, i32
  }
  func.func @transform_1(%arg0: i32) -> (i32, i32, i32) {
    %c0_i32 = arith.constant 0 : i32
    %c0_i32_0 = arith.constant 0 : i32
    %c0_i32_1 = arith.constant 0 : i32
    %c0_i32_2 = arith.constant 0 : i32
    return %c0_i32, %c0_i32_0, %c0_i32_1 : i32, i32, i32
  }
  func.func @transform_2(%arg0: i32) -> (i32, i32, i32) {
    %c0_i32 = arith.constant 0 : i32
    %c0_i32_0 = arith.constant 0 : i32
    %c0_i32_1 = arith.constant 0 : i32
    %c0_i32_2 = arith.constant 0 : i32
    return %c0_i32, %c0_i32_0, %c0_i32_1 : i32, i32, i32
  }
  func.func @transform_3(%arg0: i32) -> (i32, i32) {
    %c0_i32 = arith.constant 0 : i32
    %c0_i32_0 = arith.constant 0 : i32
    %c0_i32_1 = arith.constant 0 : i32
    return %c0_i32, %c0_i32_0 : i32, i32
  }
  func.func @transform_4(%arg0: i32) -> (i32, i32) {
    %c0_i32 = arith.constant 0 : i32
    %c0_i32_0 = arith.constant 0 : i32
    %c0_i32_1 = arith.constant 0 : i32
    return %c0_i32, %c0_i32_0 : i32, i32
  }
  func.func @transform_5(%arg0: i32) -> (i32, i32) {
    %c0_i32 = arith.constant 0 : i32
    %c0_i32_0 = arith.constant 0 : i32
    %c0_i32_1 = arith.constant 0 : i32
    return %c0_i32, %c0_i32_0 : i32, i32
  }
  func.func @transform_6(%arg0: i32) -> (i32, i32) {
    %c0_i32 = arith.constant 0 : i32
    %c0_i32_0 = arith.constant 0 : i32
    %c0_i32_1 = arith.constant 0 : i32
    return %c0_i32, %c0_i32_0 : i32, i32
  }
  func.func @transform_7(%arg0: i32) -> (i32, i32) {
    %c0_i32 = arith.constant 0 : i32
    %c0_i32_0 = arith.constant 0 : i32
    return %arg0, %c0_i32 : i32, i32
  }
}

</mosaic_0001>

<bundles_post_ra>
// kernel: mysub_network_forward.1
= control target key start
LH: loop header
LB: loop body
LE: loop exit
PB: predicated region body
PF: predicated region fallthrough
CT: control target
= control target key end

     0   :  { %v3386_v0 = vmov 0   ;;  %vm131_vm0 = vcmask 97280   ;;  %vm141_vm1 = vcmask 1045504   ;;  %vm881_vm2 = vcmask 1043456   ;;  %s4549_s1 = inlined_call_operand.vmem [shape: bf16[2,140,128], index: 1, kind: input, shape index: {}]   ;;  %s4550_s0 = inlined_call_operand.vmem [shape: bf16[1,4,48,140], index: 0, kind: input, shape index: {}]   ;;  %s4551_s2 = inlined_call_operand.vmem [shape: bf16[2,640,128], index: 2, kind: input, shape index: {}]   ;;  %s4552_s4 = inlined_call_operand.vmem [shape: f32[1,128], index: 4, kind: input, shape index: {}]   ;;  %s4553_s3 = inlined_call_operand.vmem [shape: bf16[512,128], index: 3, kind: input, shape index: {}]   ;;  %s4554_s5 = inlined_call_operand.vmem [shape: f32[1,128], index: 5, kind: input, shape index: {}]   ;;  %s4555_s6 = inlined_call_operand.vmem [shape: f32[1,128], index: 6, kind: input, shape index: {}]   ;;  %s4556_s7 = inlined_call_operand.vmem [shape: f32[8,128], index: 7, kind: output, shape index: {}]  }
   0x1   :  { %145 = vmatprep.subr.bf16.mxu0 %v3386_v0  ;;  %277 = vmatprep.subr.bf16.mxu1 %v3386_v0  ;;  %v3432_v1 = vld [vmem:[%s4549_s1] sm:$0xff]   ;;  %v3437_v2 = vld [vmem:[%s4549_s1 + $0x48] sm:$0xff]   ;;  %v3450_v4 = vld [vmem:[%s4549_s1 + $0x50] sm:$0xff]  }
   0x2   :  { %146 = vmatpush1.bf16.msra.mxu0 %v3432_v1  ;;  %v3443_v3 = vld [vmem:[%s4549_s1 + $0x8] sm:$0xff]   ;;  %278 = vmatpush1.bf16.msra.mxu1 %v3437_v2  ;;  %v3457_v5 = vld [vmem:[%s4549_s1 + $0x10] sm:$0xff]   ;;  %v3464_v6 = vld [vmem:[%s4549_s1 + $0x58] sm:$0xff]  }
   0x3   :  { %147 = vmatprep.subr.bf16.mxu0 %v3386_v0  ;;  %279 = vmatprep.subr.bf16.mxu1 %v3386_v0  ;;  %v3471_v7 = vld [vmem:[%s4549_s1 + $0x18] sm:$0xff]   ;;  %v3478_v8 = vld [vmem:[%s4549_s1 + $0x60] sm:$0xff]   ;;  %v3492_v10 = vld [vmem:[%s4549_s1 + $0x68] sm:$0xff]  }
   0x4   :  { %v3485_v9 = vld [vmem:[%s4549_s1 + $0x20] sm:$0xff]   ;;  %v3498_v11 = vld [vmem:[%s4549_s1 + $0x28] sm:$0xff]   ;;  %v3504_v12 = vld [vmem:[%s4549_s1 + $0x70] sm:$0xff]  }
   0x5   :  { %v3232_v13 = vld [vmem:[%s4550_s0 + $0x4] ss:$8 sps:$4 sm:$0xff]   ;;  %v3518_v14 = vld [vmem:[%s4549_s1 + $0x30] sm:$0xff]   ;;  %v3525_v15 = vld [vmem:[%s4549_s1 + $0x78] sm:$0xff]  }
   0x6   :  { %148 = vmatpush1.bf16.msra.mxu0 %v3443_v3  ;;  %280 = vmatpush1.bf16.msra.mxu1 %v3450_v4  ;;  %v3531_v16 = vld [vmem:[%s4549_s1 + $0x38] sm:$0xff]   ;;  %v3537_v17 = vld [vmem:[%s4549_s1 + $0x80] sm:$0xff]   ;;  %v3229_v19 = vld [vmem:[%s4549_s1 + $0x88] sm:$0x3f]  }
   0x7   :  { %149 = vmatprep.subr.bf16.mxu0 %v3386_v0  ;;  %281 = vmatprep.subr.bf16.mxu1 %v3386_v0  ;;  %v3228_v18 = vld [vmem:[%s4549_s1 + $0x40] sm:$0x3f]   ;;  %v3554_v21 = vsel %vm141_vm1, %v3229_v19, 0  ;;  %v3233_v23 = vld [vmem:[%s4550_s0 + $0x14] ss:$8 sps:$4 sm:$0xff]   ;;  %v3268_v47 = vld [vmem:[%s4551_s2 + $0x48] sm:$0xff]  }
   0x8   :  { %2541 = vmatprep.mubr.msk.bf16.mxu0 %vm131_vm0, %v3232_v13  ;;  %2571 = vmatprep.mubr.msk.bf16.mxu1 %vm131_vm0, %v3232_v13  ;;  %v3551_v20 = vsel %vm141_vm1, %v3228_v18, 0  ;;  %v3230_v22 = vld [vmem:[%s4550_s0] ss:$8 sps:$4 sm:$0xff]   ;;  %v3235_v24 = vld [vmem:[%s4550_s0 + $0x10] ss:$8 sps:$4 sm:$0xff]  }
   0x9   :  { %v3236_v25 = vld [vmem:[%s4550_s0 + $0x24] ss:$8 sps:$4 sm:$0xff]   ;;  %v3238_v26 = vld [vmem:[%s4550_s0 + $0x20] ss:$8 sps:$4 sm:$0xff]   ;;  %v3241_v27 = vld [vmem:[%s4550_s0 + $0x34] ss:$8 sps:$4 sm:$0xff]  }
   0xa   :  { %150 = vmatpush1.bf16.msra.mxu0 %v3457_v5  ;;  %282 = vmatpush1.bf16.msra.mxu1 %v3464_v6  ;;  %v3239_v28 = vld [vmem:[%s4550_s0 + $0x30] ss:$8 sps:$4 sm:$0xff]   ;;  %v3242_v29 = vld [vmem:[%s4550_s0 + $0x44] ss:$8 sps:$4 sm:$0xff]   ;;  %v3244_v30 = vld [vmem:[%s4550_s0 + $0x40] ss:$8 sps:$4 sm:$0xff]  }
   0xb   :  { %151 = vmatprep.subr.bf16.mxu0 %v3386_v0  ;;  %283 = vmatprep.subr.bf16.mxu1 %v3386_v0  ;;  %v3245_v31 = vld [vmem:[%s4550_s0 + $0x54] ss:$8 sps:$4 sm:$0xff]   ;;  %v3247_v32 = vld [vmem:[%s4550_s0 + $0x50] ss:$8 sps:$4 sm:$0xff]   ;;  %v3250_v33 = vld [vmem:[%s4550_s0 + $0x64] ss:$8 sps:$4 sm:$0xff]  }
   0xc   :  { %v3248_v34 = vld [vmem:[%s4550_s0 + $0x60] ss:$8 sps:$4 sm:$0xff]   ;;  %v3251_v35 = vld [vmem:[%s4550_s0 + $0x74] ss:$8 sps:$4 sm:$0xff]   ;;  %v3253_v36 = vld [vmem:[%s4550_s0 + $0x70] ss:$8 sps:$4 sm:$0xff]  }
   0xd   :  { %v3254_v37 = vld [vmem:[%s4550_s0 + $0x84] ss:$8 sps:$4 sm:$0xff]   ;;  %v3256_v38 = vld [vmem:[%s4550_s0 + $0x80] ss:$8 sps:$4 sm:$0xff]   ;;  %v3259_v39 = vld [vmem:[%s4550_s0 + $0x94] ss:$8 sps:$4 sm:$0xff]  }
   0xe   :  { %152 = vmatpush1.bf16.msra.mxu0 %v3471_v7  ;;  %284 = vmatpush1.bf16.msra.mxu1 %v3478_v8  ;;  %v3257_v40 = vld [vmem:[%s4550_s0 + $0x90] ss:$8 sps:$4 sm:$0xff]   ;;  %v3260_v41 = vld [vmem:[%s4550_s0 + $0xa4] ss:$8 sps:$4 sm:$0xff]   ;;  %v3262_v42 = vld [vmem:[%s4550_s0 + $0xa0] ss:$8 sps:$4 sm:$0xff]  }
   0xf   :  { %153 = vmatprep.subr.bf16.mxu0 %v3386_v0  ;;  %285 = vmatprep.subr.bf16.mxu1 %v3386_v0  ;;  %v3263_v43 = vld [vmem:[%s4550_s0 + $0xb4] ss:$8 sps:$4 sm:$0xff]   ;;  %v3265_v44 = vld [vmem:[%s4550_s0 + $0xb0] ss:$8 sps:$4 sm:$0xff]   ;;  %v3266_v45 = vld [vmem:[%s4551_s2 + $0x40] sm:$0xff]  }
  0x10   :  { %v3267_v46 = vld [vmem:[%s4551_s2] sm:$0xff]   ;;  %v3269_v48 = vld [vmem:[%s4551_s2 + $0x8] sm:$0xff]   ;;  %v3772_v49 = vld [vmem:[%s4551_s2 + $0x50] sm:$0xff]  }
  0x11   :  { %v3778_v50 = vld [vmem:[%s4551_s2 + $0x10] sm:$0xff]   ;;  %v3784_v51 = vld [vmem:[%s4551_s2 + $0xc0] sm:$0xff]   ;;  %v3789_v52 = vld [vmem:[%s4551_s2 + $0x58] sm:$0xff]  }
  0x12   :  { %154 = vmatpush1.bf16.msra.mxu0 %v3485_v9  ;;  %286 = vmatpush1.bf16.msra.mxu1 %v3492_v10  ;;  %v3794_v53 = vld [vmem:[%s4551_s2 + $0x80] sm:$0xff]   ;;  %v3799_v54 = vld [vmem:[%s4551_s2 + $0x18] sm:$0xff]   ;;  %v3804_v55 = vld [vmem:[%s4551_s2 + $0xc8] sm:$0xff]  }
  0x13   :  { %155 = vmatprep.subr.bf16.mxu0 %v3386_v0  ;;  %287 = vmatprep.subr.bf16.mxu1 %v3386_v0  ;;  %v3809_v56 = vld [vmem:[%s4551_s2 + $0x60] sm:$0xff]   ;;  %v3816_v57 = vld [vmem:[%s4551_s2 + $0x88] sm:$0xff]   ;;  %v3832_v59 = vld [vmem:[%s4551_s2 + $0xd0] sm:$0xff]  }
  0x14   :  { %v3821_v58 = vld [vmem:[%s4551_s2 + $0x20] sm:$0xff]   ;;  %v3837_v60 = vld [vmem:[%s4551_s2 + $0x68] sm:$0xff]   ;;  %v3842_v61 = vld [vmem:[%s4551_s2 + $0x90] sm:$0xff]  }
  0x15   :  { %v3848_v62 = vld [vmem:[%s4551_s2 + $0x28] sm:$0xff]   ;;  %v3856_v63 = vld [vmem:[%s4551_s2 + $0xd8] sm:$0xff]  }
  0x16   :  { %156 = vmatpush1.bf16.msra.mxu0 %v3498_v11  ;;  %288 = vmatpush1.bf16.msra.mxu1 %v3504_v12 }
  0x17   :  { %157 = vmatprep.subr.bf16.mxu0 %v3386_v0  ;;  %289 = vmatprep.subr.bf16.mxu1 %v3386_v0 }
  0x1a   :  { %158 = vmatpush1.bf16.msra.mxu0 %v3518_v14  ;;  %290 = vmatpush1.bf16.msra.mxu1 %v3525_v15 }
  0x1b   :  { %159 = vmatprep.subr.bf16.mxu0 %v3386_v0  ;;  %291 = vmatprep.subr.bf16.mxu1 %v3386_v0 }
  0x1e   :  { %160 = vmatpush1.bf16.msra.mxu0 %v3531_v16  ;;  %292 = vmatpush1.bf16.msra.mxu1 %v3537_v17 }
  0x1f   :  { %161 = vmatprep.subr.bf16.mxu0 %v3386_v0  ;;  %293 = vmatprep.subr.bf16.mxu1 %v3386_v0 }
  0x22   :  { %162 = vmatpush1.bf16.msra.mxu0 %v3551_v20  ;;  %294 = vmatpush1.bf16.msra.mxu1 %v3554_v21 }
  0x23   :  { %383 = vmatprep.subr.bf16.mxu0 %v3386_v0  ;;  %446 = vmatprep.subr.bf16.mxu1 %v3386_v0 }
  0x25   :  { %178 = vmatmul.mubr.bf16.vlgmr.msra.gmra.mrb[0].mxu0 %v3230_v22  ;;  %310 = vmatmul.mubr.bf16.vlgmr.msra.gmra.mrb[0].mxu1 %v3230_v22  ;;  %v3946_v22 = vld [vmem:[%s4551_s2 + $0x180] sm:$0xff]  }
  0x26   :  { %384 = vmatpush1.bf16.msra.mxu0 %v3432_v1  ;;  %447 = vmatpush1.bf16.msra.mxu1 %v3437_v2 }
  0x27   :  { %385 = vmatprep.subr.bf16.mxu0 %v3386_v0  ;;  %448 = vmatprep.subr.bf16.mxu1 %v3386_v0 }
  0x28   :  { %2542 = vmatprep.mubr.msk.bf16.mxu0 %vm131_vm0, %v3233_v23  ;;  %2572 = vmatprep.mubr.msk.bf16.mxu1 %vm131_vm0, %v3233_v23 }
  0x2a   :  { %386 = vmatpush1.bf16.msra.mxu0 %v3443_v3  ;;  %449 = vmatpush1.bf16.msra.mxu1 %v3450_v4 }
  0x2b   :  { %387 = vmatprep.subr.bf16.mxu0 %v3386_v0  ;;  %450 = vmatprep.subr.bf16.mxu1 %v3386_v0 }
  0x2d   :  { %186 = vmatmul.mubr.bf16.gmra.mrb[4].mxu0 %v3235_v24  ;;  %318 = vmatmul.mubr.bf16.gmra.mrb[4].mxu1 %v3235_v24 }
  0x2e   :  { %388 = vmatpush1.bf16.msra.mxu0 %v3457_v5  ;;  %451 = vmatpush1.bf16.msra.mxu1 %v3464_v6 }
  0x2f   :  { %389 = vmatprep.subr.bf16.mxu0 %v3386_v0  ;;  %452 = vmatprep.subr.bf16.mxu1 %v3386_v0 }
  0x30   :  { %2543 = vmatprep.mubr.msk.bf16.mxu0 %vm131_vm0, %v3236_v25  ;;  %2573 = vmatprep.mubr.msk.bf16.mxu1 %vm131_vm0, %v3236_v25 }
  0x32   :  { %390 = vmatpush1.bf16.msra.mxu0 %v3471_v7  ;;  %453 = vmatpush1.bf16.msra.mxu1 %v3478_v8 }
  0x33   :  { %391 = vmatprep.subr.bf16.mxu0 %v3386_v0  ;;  %454 = vmatprep.subr.bf16.mxu1 %v3386_v0 }
  0x35   :  { %194 = vmatmul.mubr.bf16.gmra.mrb[8].mxu0 %v3238_v26  ;;  %326 = vmatmul.mubr.bf16.gmra.mrb[8].mxu1 %v3238_v26 }
  0x36   :  { %392 = vmatpush1.bf16.msra.mxu0 %v3485_v9  ;;  %455 = vmatpush1.bf16.msra.mxu1 %v3492_v10 }
  0x37   :  { %393 = vmatprep.subr.bf16.mxu0 %v3386_v0  ;;  %456 = vmatprep.subr.bf16.mxu1 %v3386_v0 }
  0x38   :  { %2586 = vmatprep.mubr.msk.bf16.mxu0 %vm131_vm0, %v3241_v27  ;;  %2589 = vmatprep.mubr.msk.bf16.mxu1 %vm131_vm0, %v3241_v27 }
  0x3a   :  { %394 = vmatpush1.bf16.msra.mxu0 %v3498_v11  ;;  %457 = vmatpush1.bf16.msra.mxu1 %v3504_v12 }
  0x3b   :  { %395 = vmatprep.subr.bf16.mxu0 %v3386_v0  ;;  %458 = vmatprep.subr.bf16.mxu1 %v3386_v0 }
  0x3e   :  { %396 = vmatpush1.bf16.msra.mxu0 %v3518_v14  ;;  %459 = vmatpush1.bf16.msra.mxu1 %v3525_v15 }
  0x3f   :  { %397 = vmatprep.subr.bf16.mxu0 %v3386_v0  ;;  %460 = vmatprep.subr.bf16.mxu1 %v3386_v0 }
  0x42   :  { %398 = vmatpush1.bf16.msra.mxu0 %v3531_v16  ;;  %461 = vmatpush1.bf16.msra.mxu1 %v3537_v17 }
  0x43   :  { %399 = vmatprep.subr.bf16.mxu0 %v3386_v0  ;;  %462 = vmatprep.subr.bf16.mxu1 %v3386_v0 }
  0x46   :  { %400 = vmatpush1.bf16.msra.mxu0 %v3551_v20  ;;  %463 = vmatpush1.bf16.msra.mxu1 %v3554_v21 }
  0x47   :  { %574 = vmatprep.subr.bf16.mxu0 %v3386_v0  ;;  %631 = vmatprep.subr.bf16.mxu1 %v3386_v0 }
  0x49   :  { %416 = vmatmul.mubr.bf16.vlgmr.msra.gmra.mrb[12].mxu0 %v3239_v28  ;;  %479 = vmatmul.mubr.bf16.vlgmr.msra.gmra.mrb[12].mxu1 %v3239_v28 }
  0x4a   :  { %575 = vmatpush1.bf16.msra.mxu0 %v3432_v1  ;;  %632 = vmatpush1.bf16.msra.mxu1 %v3437_v2 }
  0x4b   :  { %576 = vmatprep.subr.bf16.mxu0 %v3386_v0  ;;  %633 = vmatprep.subr.bf16.mxu1 %v3386_v0 }
  0x4c   :  { %2587 = vmatprep.mubr.msk.bf16.mxu0 %vm131_vm0, %v3242_v29  ;;  %2590 = vmatprep.mubr.msk.bf16.mxu1 %vm131_vm0, %v3242_v29 }
  0x4e   :  { %577 = vmatpush1.bf16.msra.mxu0 %v3443_v3  ;;  %634 = vmatpush1.bf16.msra.mxu1 %v3450_v4 }
  0x4f   :  { %578 = vmatprep.subr.bf16.mxu0 %v3386_v0  ;;  %635 = vmatprep.subr.bf16.mxu1 %v3386_v0 }
  0x51   :  { %424 = vmatmul.mubr.bf16.gmra.mrb[16].mxu0 %v3244_v30  ;;  %487 = vmatmul.mubr.bf16.gmra.mrb[16].mxu1 %v3244_v30 }
  0x52   :  { %579 = vmatpush1.bf16.msra.mxu0 %v3457_v5  ;;  %636 = vmatpush1.bf16.msra.mxu1 %v3464_v6 }
  0x53   :  { %580 = vmatprep.subr.bf16.mxu0 %v3386_v0  ;;  %637 = vmatprep.subr.bf16.mxu1 %v3386_v0 }
  0x54   :  { %2588 = vmatprep.mubr.msk.bf16.mxu0 %vm131_vm0, %v3245_v31  ;;  %2591 = vmatprep.mubr.msk.bf16.mxu1 %vm131_vm0, %v3245_v31 }
  0x56   :  { %581 = vmatpush1.bf16.msra.mxu0 %v3471_v7  ;;  %638 = vmatpush1.bf16.msra.mxu1 %v3478_v8 }
  0x57   :  { %582 = vmatprep.subr.bf16.mxu0 %v3386_v0  ;;  %639 = vmatprep.subr.bf16.mxu1 %v3386_v0 }
  0x59   :  { %432 = vmatmul.mubr.bf16.gmra.mrb[20].mxu0 %v3247_v32  ;;  %495 = vmatmul.mubr.bf16.gmra.mrb[20].mxu1 %v3247_v32 }
  0x5a   :  { %583 = vmatpush1.bf16.msra.mxu0 %v3485_v9  ;;  %640 = vmatpush1.bf16.msra.mxu1 %v3492_v10 }
  0x5b   :  { %584 = vmatprep.subr.bf16.mxu0 %v3386_v0  ;;  %641 = vmatprep.subr.bf16.mxu1 %v3386_v0 }
  0x5c   :  { %2605 = vmatprep.mubr.msk.bf16.mxu0 %vm131_vm0, %v3250_v33  ;;  %2608 = vmatprep.mubr.msk.bf16.mxu1 %vm131_vm0, %v3250_v33 }
  0x5e   :  { %585 = vmatpush1.bf16.msra.mxu0 %v3498_v11  ;;  %642 = vmatpush1.bf16.msra.mxu1 %v3504_v12 }
  0x5f   :  { %586 = vmatprep.subr.bf16.mxu0 %v3386_v0  ;;  %643 = vmatprep.subr.bf16.mxu1 %v3386_v0 }
  0x62   :  { %587 = vmatpush1.bf16.msra.mxu0 %v3518_v14  ;;  %644 = vmatpush1.bf16.msra.mxu1 %v3525_v15 }
  0x63   :  { %588 = vmatprep.subr.bf16.mxu0 %v3386_v0  ;;  %645 = vmatprep.subr.bf16.mxu1 %v3386_v0 }
  0x66   :  { %589 = vmatpush1.bf16.msra.mxu0 %v3531_v16  ;;  %646 = vmatpush1.bf16.msra.mxu1 %v3537_v17 }
  0x67   :  { %590 = vmatprep.subr.bf16.mxu0 %v3386_v0  ;;  %647 = vmatprep.subr.bf16.mxu1 %v3386_v0 }
  0x6a   :  { %591 = vmatpush1.bf16.msra.mxu0 %v3551_v20  ;;  %648 = vmatpush1.bf16.msra.mxu1 %v3554_v21 }
  0x6b   :  { %737 = vmatprep.subr.bf16.mxu0 %v3386_v0  ;;  %800 = vmatprep.subr.bf16.mxu1 %v3386_v0 }
  0x6d   :  { %607 = vmatmul.mubr.bf16.vlgmr.msra.gmra.mrb[24].mxu0 %v3248_v34  ;;  %664 = vmatmul.mubr.bf16.vlgmr.msra.gmra.mrb[24].mxu1 %v3248_v34 }
  0x6e   :  { %738 = vmatpush1.bf16.msra.mxu0 %v3432_v1  ;;  %801 = vmatpush1.bf16.msra.mxu1 %v3437_v2  ;;  %v3866_v1 = vld [vmem:[%s4551_s2 + $0x98] sm:$0xff]   ;;  %v3872_v2 = vld [vmem:[%s4551_s2 + $0x30] sm:$0xff]  }
  0x6f   :  { %739 = vmatprep.subr.bf16.mxu0 %v3386_v0  ;;  %802 = vmatprep.subr.bf16.mxu1 %v3386_v0 }
  0x70   :  { %2606 = vmatprep.mubr.msk.bf16.mxu0 %vm131_vm0, %v3251_v35  ;;  %2609 = vmatprep.mubr.msk.bf16.mxu1 %vm131_vm0, %v3251_v35 }
  0x72   :  { %740 = vmatpush1.bf16.msra.mxu0 %v3443_v3  ;;  %803 = vmatpush1.bf16.msra.mxu1 %v3450_v4  ;;  %v3880_v3 = vld [vmem:[%s4551_s2 + $0xe0] sm:$0xff]   ;;  %v3885_v4 = vld [vmem:[%s4551_s2 + $0x78] sm:$0xff]  }
  0x73   :  { %741 = vmatprep.subr.bf16.mxu0 %v3386_v0  ;;  %804 = vmatprep.subr.bf16.mxu1 %v3386_v0 }
  0x75   :  { %615 = vmatmul.mubr.bf16.gmra.mrb[28].mxu0 %v3253_v36  ;;  %672 = vmatmul.mubr.bf16.gmra.mrb[28].mxu1 %v3253_v36 }
  0x76   :  { %742 = vmatpush1.bf16.msra.mxu0 %v3457_v5  ;;  %805 = vmatpush1.bf16.msra.mxu1 %v3464_v6  ;;  %v3890_v5 = vld [vmem:[%s4551_s2 + $0xa0] sm:$0xff]   ;;  %v3896_v6 = vld [vmem:[%s4551_s2 + $0x38] sm:$0xff]  }
  0x77   :  { %743 = vmatprep.subr.bf16.mxu0 %v3386_v0  ;;  %806 = vmatprep.subr.bf16.mxu1 %v3386_v0 }
  0x78   :  { %2607 = vmatprep.mubr.msk.bf16.mxu0 %vm131_vm0, %v3254_v37  ;;  %2610 = vmatprep.mubr.msk.bf16.mxu1 %vm131_vm0, %v3254_v37 }
  0x7a   :  { %744 = vmatpush1.bf16.msra.mxu0 %v3471_v7  ;;  %807 = vmatpush1.bf16.msra.mxu1 %v3478_v8  ;;  %v3904_v7 = vld [vmem:[%s4551_s2 + $0xe8] sm:$0xff]  }
  0x7b   :  { %745 = vmatprep.subr.bf16.mxu0 %v3386_v0  ;;  %808 = vmatprep.subr.bf16.mxu1 %v3386_v0  ;;  %v3909_v8 = vld [vmem:[%s4551_s2 + $0xa8] sm:$0xff]  }
  0x7d   :  { %623 = vmatmul.mubr.bf16.gmra.mrb[32].mxu0 %v3256_v38  ;;  %680 = vmatmul.mubr.bf16.gmra.mrb[32].mxu1 %v3256_v38 }
  0x7e   :  { %746 = vmatpush1.bf16.msra.mxu0 %v3485_v9  ;;  %809 = vmatpush1.bf16.msra.mxu1 %v3492_v10  ;;  %v3914_v9 = vld [vmem:[%s4551_s2 + $0x100] sm:$0xff]   ;;  %v3922_v10 = vld [vmem:[%s4551_s2 + $0xf0] sm:$0xff]  }
  0x7f   :  { %747 = vmatprep.subr.bf16.mxu0 %v3386_v0  ;;  %810 = vmatprep.subr.bf16.mxu1 %v3386_v0 }
  0x80   :  { %2623 = vmatprep.mubr.msk.bf16.mxu0 %vm131_vm0, %v3259_v39  ;;  %2626 = vmatprep.mubr.msk.bf16.mxu1 %vm131_vm0, %v3259_v39 }
  0x82   :  { %748 = vmatpush1.bf16.msra.mxu0 %v3498_v11  ;;  %811 = vmatpush1.bf16.msra.mxu1 %v3504_v12  ;;  %v3927_v11 = vld [vmem:[%s4551_s2 + $0xb0] sm:$0xff]   ;;  %v3934_v12 = vld [vmem:[%s4551_s2 + $0xf8] sm:$0xff]  }
  0x83   :  { %749 = vmatprep.subr.bf16.mxu0 %v3386_v0  ;;  %812 = vmatprep.subr.bf16.mxu1 %v3386_v0 }
  0x86   :  { %750 = vmatpush1.bf16.msra.mxu0 %v3518_v14  ;;  %813 = vmatpush1.bf16.msra.mxu1 %v3525_v15  ;;  %v3939_v14 = vld [vmem:[%s4551_s2 + $0xb8] sm:$0xff]  }
  0x87   :  { %751 = vmatprep.subr.bf16.mxu0 %v3386_v0  ;;  %814 = vmatprep.subr.bf16.mxu1 %v3386_v0 }
  0x8a   :  { %752 = vmatpush1.bf16.msra.mxu0 %v3531_v16  ;;  %815 = vmatpush1.bf16.msra.mxu1 %v3537_v17 }
  0x8b   :  { %753 = vmatprep.subr.bf16.mxu0 %v3386_v0  ;;  %816 = vmatprep.subr.bf16.mxu1 %v3386_v0  ;;  %v3861_v0 = vld [vmem:[%s4551_s2 + $0x70] sm:$0xff]  }
  0x8e   :  { %754 = vmatpush1.bf16.msra.mxu0 %v3551_v20  ;;  %817 = vmatpush1.bf16.msra.mxu1 %v3554_v21 }
  0x8f   :  { %2823 = vmatprep.subr.bf16.mxu0 %v3266_v45  ;;  %2851 = vmatprep.subr.bf16.mxu1 %v3784_v51 }
  0x91   :  { %770 = vmatmul.mubr.bf16.vlgmr.msra.gmra.mrb[36].mxu0 %v3257_v40  ;;  %833 = vmatmul.mubr.bf16.vlgmr.msra.gmra.mrb[36].mxu1 %v3257_v40 }
  0x92   :  { %2624 = vmatprep.mubr.msk.bf16.mxu0 %vm131_vm0, %v3260_v41  ;;  %2627 = vmatprep.mubr.msk.bf16.mxu1 %vm131_vm0, %v3260_v41 }
  0x93   :  { %2824 = vmatpush3.bf16.msra.mxu0 %v3267_v46  ;;  %2852 = vmatpush3.bf16.msra.mxu1 %v3794_v53 }
  0x94   :  { %2825 = vmatprep.subr.bf16.mxu0 %v3268_v47  ;;  %2853 = vmatprep.subr.bf16.mxu1 %v3804_v55 }
  0x97   :  { %2826 = vmatpush3.bf16.msra.mxu0 %v3269_v48  ;;  %2854 = vmatpush3.bf16.msra.mxu1 %v3816_v57 }
  0x98   :  { %2827 = vmatprep.subr.bf16.mxu0 %v3772_v49  ;;  %2855 = vmatprep.subr.bf16.mxu1 %v3832_v59 }
  0x99   :  { %778 = vmatmul.mubr.bf16.gmra.mrb[40].mxu0 %v3262_v42  ;;  %841 = vmatmul.mubr.bf16.gmra.mrb[40].mxu1 %v3262_v42 }
  0x9a   :  { %2625 = vmatprep.mubr.msk.bf16.mxu0 %vm131_vm0, %v3263_v43  ;;  %2628 = vmatprep.mubr.msk.bf16.mxu1 %vm131_vm0, %v3263_v43 }
  0x9b   :  { %2828 = vmatpush3.bf16.msra.mxu0 %v3778_v50  ;;  %2856 = vmatpush3.bf16.msra.mxu1 %v3842_v61 }
  0x9c   :  { %2829 = vmatprep.subr.bf16.mxu0 %v3789_v52  ;;  %2857 = vmatprep.subr.bf16.mxu1 %v3856_v63 }
  0x9f   :  { %2830 = vmatpush3.bf16.msra.mxu0 %v3799_v54  ;;  %2858 = vmatpush3.bf16.msra.mxu1 %v3866_v1 }
  0xa0   :  { %2831 = vmatprep.subr.bf16.mxu0 %v3809_v56  ;;  %2859 = vmatprep.subr.bf16.mxu1 %v3880_v3 }
  0xa1   :  { %786 = vmatmul.mubr.bf16.gmra.mrb[44].mxu0 %v3265_v44  ;;  %849 = vmatmul.mubr.bf16.gmra.mrb[44].mxu1 %v3265_v44 }
  0xa3   :  { %2832 = vmatpush3.bf16.msra.mxu0 %v3821_v58  ;;  %2860 = vmatpush3.bf16.msra.mxu1 %v3890_v5 }
  0xa4   :  { %2833 = vmatprep.subr.bf16.mxu0 %v3837_v60  ;;  %2861 = vmatprep.subr.bf16.mxu1 %v3904_v7 }
  0xa7   :  { %2834 = vmatpush3.bf16.msra.mxu0 %v3848_v62  ;;  %2862 = vmatpush3.bf16.msra.mxu1 %v3909_v8 }
  0xa8   :  { %2835 = vmatprep.subr.bf16.mxu0 %v3861_v0  ;;  %2863 = vmatprep.subr.bf16.mxu1 %v3922_v10 }
  0xab   :  { %2836 = vmatpush3.bf16.msra.mxu0 %v3872_v2  ;;  %2864 = vmatpush3.bf16.msra.mxu1 %v3927_v11 }
  0xac   :  { %2837 = vmatprep.subr.bf16.mxu0 %v3885_v4  ;;  %2865 = vmatprep.subr.bf16.mxu1 %v3934_v12 }
  0xaf   :  { %2838 = vmatpush3.bf16.msra.mxu0 %v3896_v6  ;;  %2866 = vmatpush3.bf16.msra.mxu1 %v3939_v14 }
  0xb0   :  { %3131 = vmatprep.subr.bf16.mxu0 %v3914_v9  ;;  %2889 = vmatprep.subr.bf16.mxu1 %v3946_v22 }
  0xf8   :  { %v179_v13 = vpop.f32.mrb[0].mxu0  ;;  %v311_v15 = vpop.f32.mrb[0].mxu1 }
  0xf9   :  { %v181_v16 = vpop.f32.mrb[1].mxu0  ;;  %v334_v17 = vmax.f32 %v179_v13, %v311_v15  ;;  %v313_v18 = vpop.f32.mrb[1].mxu1  ;;  %v3952_v13 = vld [vmem:[%s4552_s4] ss:$0 sm:$0xff] }
  0xfa   :  { %v182_v19 = vpop.f32.mrb[2].mxu0  ;;  %v314_v20 = vpop.f32.mrb[2].mxu1 }
  0xfb   :  { %v184_v21 = vpop.f32.mrb[3].mxu0  ;;  %v335_v23 = vmax.f32 %v182_v19, %v314_v20  ;;  %v316_v24 = vpop.f32.mrb[3].mxu1 }
 0x100   :  { %v187_v25 = vpop.f32.mrb[4].mxu0  ;;  %v319_v27 = vpop.f32.mrb[4].mxu1 }
 0x101   :  { %v189_v26 = vpop.f32.mrb[5].mxu0  ;;  %v336_v28 = vmax.f32 %v187_v25, %v319_v27  ;;  %v321_v30 = vpop.f32.mrb[5].mxu1 }
 0x102   :  { %v190_v29 = vpop.f32.mrb[6].mxu0  ;;  %v322_v32 = vpop.f32.mrb[6].mxu1 }
 0x103   :  { %v192_v31 = vpop.f32.mrb[7].mxu0  ;;  %v337_v33 = vmax.f32 %v190_v29, %v322_v32  ;;  %v324_v34 = vpop.f32.mrb[7].mxu1 }
 0x108   :  { %v195_v35 = vpop.f32.mrb[8].mxu0  ;;  %v327_v37 = vpop.f32.mrb[8].mxu1 }
 0x109   :  { %v197_v36 = vpop.f32.mrb[9].mxu0  ;;  %v338_v38 = vmax.f32 %v195_v35, %v327_v37  ;;  %v329_v40 = vpop.f32.mrb[9].mxu1 }
 0x10a   :  { %v198_v39 = vpop.f32.mrb[10].mxu0  ;;  %v330_v42 = vpop.f32.mrb[10].mxu1 }
 0x10b   :  { %v200_v41 = vpop.f32.mrb[11].mxu0  ;;  %v339_v43 = vmax.f32 %v198_v39, %v330_v42  ;;  %v332_v44 = vpop.f32.mrb[11].mxu1 }
 0x11c   :  { %v417_v45 = vpop.f32.mrb[12].mxu0  ;;  %v480_v47 = vpop.f32.mrb[12].mxu1 }
 0x11d   :  { %v440_v46 = vmax.f32 %v334_v17, %v417_v45  ;;  %v419_v48 = vpop.f32.mrb[13].mxu0  ;;  %v482_v15 = vpop.f32.mrb[13].mxu1 }
 0x11e   :  { %v420_v16 = vpop.f32.mrb[14].mxu0  ;;  %v483_v20 = vpop.f32.mrb[14].mxu1 }
 0x11f   :  { %v503_v18 = vmax.f32 %v440_v46, %v480_v47  ;;  %v441_v19 = vmax.f32 %v335_v23, %v420_v16  ;;  %v422_v21 = vpop.f32.mrb[15].mxu0  ;;  %v485_v24 = vpop.f32.mrb[15].mxu1 }
 0x121   :  { %v516_v25 = vadd.f32 %v3952_v13, %v503_v18  ;;  %v504_v26 = vmax.f32 %v441_v19, %v483_v20 }
 0x123   :  { %v517_v27 = vadd.f32 %v3952_v13, %v504_v26  ;;  %v522_v29 = vmax.f32 %v516_v25, 0.0 }
 0x124   :  { %v425_v17 = vpop.f32.mrb[16].mxu0  ;;  %v488_v34 = vpop.f32.mrb[16].mxu1 }
 0x125   :  { %v523_v30 = vmax.f32 %v517_v27, 0.0  ;;  %v442_v31 = vmax.f32 %v336_v28, %v425_v17  ;;  %v427_v32 = vpop.f32.mrb[17].mxu0  ;;  %v490_v36 = vpop.f32.mrb[17].mxu1 }
 0x126   :  { %v428_v35 = vpop.f32.mrb[18].mxu0  ;;  %v491_v40 = vpop.f32.mrb[18].mxu1 }
 0x127   :  { %v3956_v37 = vpack.c.bf16 %v523_v30, %v522_v29  ;;  %v443_v39 = vmax.f32 %v337_v33, %v428_v35  ;;  %v505_v23 = vmax.f32 %v442_v31, %v488_v34  ;;  %v430_v41 = vpop.f32.mrb[19].mxu0  ;;  %v493_v42 = vpop.f32.mrb[19].mxu1 }
 0x129   :  { %v518_v44 = vadd.f32 %v3952_v13, %v505_v23  ;;  %v506_v45 = vmax.f32 %v443_v39, %v491_v40 }
 0x12b   :  { %v519_v46 = vadd.f32 %v3952_v13, %v506_v45  ;;  %v524_v48 = vmax.f32 %v518_v44, 0.0 }
 0x12c   :  { %v433_v47 = vpop.f32.mrb[20].mxu0  ;;  %v496_v18 = vpop.f32.mrb[20].mxu1 }
 0x12d   :  { %v525_v15 = vmax.f32 %v519_v46, 0.0  ;;  %v444_v28 = vmax.f32 %v338_v38, %v433_v47  ;;  %v435_v16 = vpop.f32.mrb[21].mxu0  ;;  %v498_v20 = vpop.f32.mrb[21].mxu1 }
 0x12e   :  { %v436_v19 = vpop.f32.mrb[22].mxu0  ;;  %v499_v25 = vpop.f32.mrb[22].mxu1 }
 0x12f   :  { %v3960_v21 = vpack.c.bf16 %v525_v15, %v524_v48  ;;  %v445_v33 = vmax.f32 %v339_v43, %v436_v19  ;;  %v507_v24 = vmax.f32 %v444_v28, %v496_v18  ;;  %v438_v26 = vpop.f32.mrb[23].mxu0  ;;  %v501_v27 = vpop.f32.mrb[23].mxu1 }
 0x131   :  { %v520_v17 = vadd.f32 %v3952_v13, %v507_v24  ;;  %v508_v29 = vmax.f32 %v445_v33, %v499_v25 }
 0x133   :  { %v521_v30 = vadd.f32 %v3952_v13, %v508_v29  ;;  %v526_v31 = vmax.f32 %v520_v17, 0.0 }
 0x135   :  { %v527_v32 = vmax.f32 %v521_v30, 0.0 }
 0x137   :  { %v3964_v34 = vpack.c.bf16 %v527_v32, %v526_v31 }
 0x140   :  { %v608_v38 = vpop.f32.mrb[24].mxu0  ;;  %v665_v35 = vpop.f32.mrb[24].mxu1 }
 0x141   :  { %v610_v36 = vpop.f32.mrb[25].mxu0  ;;  %v688_v39 = vmax.f32 %v608_v38, %v665_v35  ;;  %v667_v23 = vpop.f32.mrb[25].mxu1 }
 0x142   :  { %v611_v40 = vpop.f32.mrb[26].mxu0  ;;  %v668_v43 = vpop.f32.mrb[26].mxu1 }
 0x143   :  { %v613_v41 = vpop.f32.mrb[27].mxu0  ;;  %v689_v42 = vmax.f32 %v611_v40, %v668_v43  ;;  %v670_v44 = vpop.f32.mrb[27].mxu1 }
 0x148   :  { %v616_v45 = vpop.f32.mrb[28].mxu0  ;;  %v673_v47 = vpop.f32.mrb[28].mxu1 }
 0x149   :  { %v618_v46 = vpop.f32.mrb[29].mxu0  ;;  %v690_v48 = vmax.f32 %v616_v45, %v673_v47  ;;  %v675_v28 = vpop.f32.mrb[29].mxu1 }
 0x14a   :  { %v619_v15 = vpop.f32.mrb[30].mxu0  ;;  %v676_v18 = vpop.f32.mrb[30].mxu1 }
 0x14b   :  { %v621_v16 = vpop.f32.mrb[31].mxu0  ;;  %v691_v19 = vmax.f32 %v619_v15, %v676_v18  ;;  %v678_v20 = vpop.f32.mrb[31].mxu1 }
 0x150   :  { %v624_v33 = vpop.f32.mrb[32].mxu0  ;;  %v681_v25 = vpop.f32.mrb[32].mxu1 }
 0x151   :  { %v626_v24 = vpop.f32.mrb[33].mxu0  ;;  %v692_v26 = vmax.f32 %v624_v33, %v681_v25  ;;  %v683_v17 = vpop.f32.mrb[33].mxu1 }
 0x152   :  { %v627_v27 = vpop.f32.mrb[34].mxu0  ;;  %v684_v30 = vpop.f32.mrb[34].mxu1 }
 0x153   :  { %v629_v29 = vpop.f32.mrb[35].mxu0  ;;  %v693_v31 = vmax.f32 %v627_v27, %v684_v30  ;;  %v686_v32 = vpop.f32.mrb[35].mxu1 }
 0x164   :  { %v771_v38 = vpop.f32.mrb[36].mxu0  ;;  %v834_v36 = vpop.f32.mrb[36].mxu1 }
 0x165   :  { %v794_v35 = vmax.f32 %v688_v39, %v771_v38  ;;  %v773_v23 = vpop.f32.mrb[37].mxu0  ;;  %v836_v40 = vpop.f32.mrb[37].mxu1 }
 0x166   :  { %v774_v43 = vpop.f32.mrb[38].mxu0  ;;  %v837_v45 = vpop.f32.mrb[38].mxu1 }
 0x167   :  { %v857_v41 = vmax.f32 %v794_v35, %v834_v36  ;;  %v795_v44 = vmax.f32 %v689_v42, %v774_v43  ;;  %v776_v46 = vpop.f32.mrb[39].mxu0  ;;  %v839_v47 = vpop.f32.mrb[39].mxu1  ;;  %v3973_v36 = vld [vmem:[%s4551_s2 + $0x108] sm:$0xff]   ;;  %v3984_v43 = vld [vmem:[%s4551_s2 + $0x110] sm:$0xff]  }
 0x169   :  { %v863_v15 = vadd.f32 %v3952_v13, %v857_v41  ;;  %v858_v28 = vmax.f32 %v795_v44, %v837_v45 }
 0x16b   :  { %v864_v16 = vadd.f32 %v3952_v13, %v858_v28  ;;  %v869_v20 = vmax.f32 %v863_v15, 0.0 }
 0x16c   :  { %v779_v18 = vpop.f32.mrb[40].mxu0  ;;  %v842_v25 = vpop.f32.mrb[40].mxu1 }
 0x16d   :  { %v870_v33 = vmax.f32 %v864_v16, 0.0  ;;  %v796_v24 = vmax.f32 %v690_v48, %v779_v18  ;;  %v781_v39 = vpop.f32.mrb[41].mxu0  ;;  %v844_v27 = vpop.f32.mrb[41].mxu1 }
 0x16e   :  { %v782_v17 = vpop.f32.mrb[42].mxu0  ;;  %v845_v32 = vpop.f32.mrb[42].mxu1 }
 0x16f   :  { %v3968_v29 = vpack.c.bf16 %v870_v33, %v869_v20  ;;  %v859_v30 = vmax.f32 %v796_v24, %v842_v25  ;;  %v797_v42 = vmax.f32 %v691_v19, %v782_v17  ;;  %v784_v38 = vpop.f32.mrb[43].mxu0  ;;  %v847_v35 = vpop.f32.mrb[43].mxu1  ;;  %v883_v25 = vrot.slane %v3960_v21, 4 }
 0x171   :  { %v865_v23 = vadd.f32 %v3952_v13, %v859_v30  ;;  %v860_v40 = vmax.f32 %v797_v42, %v845_v32  ;;  %1251 = vmatprep.mubr.bf16.mxu0 %v3968_v29  ;;  %v882_v42 = vrot.slane %v3956_v37, 4  ;;  %v4005_v32 = vld [vmem:[%s4551_s2 + $0x140] sm:$0xff]  }
 0x172   :  { %1252 = vmatmul.mubr.bf16.vlgmr.msra.gmra.mrb[48].mxu0 %v3956_v37 }
 0x173   :  { %v866_v48 = vadd.f32 %v3952_v13, %v860_v40  ;;  %3132 = vmatpush3.bf16.msra.mxu0 %v3914_v9  ;;  %v871_v41 = vmax.f32 %v865_v23, 0.0  ;;  %v4016_v23 = vld [vmem:[%s4551_s2 + $0x188] sm:$0xff]   ;;  %v4020_v40 = vsel %vm881_vm2, %v882_v42, %v883_v25 }
 0x174   :  { %v787_v19 = vpop.f32.mrb[44].mxu0  ;;  %3133 = vmatprep.subr.bf16.mxu0 %v3973_v36  ;;  %v850_v47 = vpop.f32.mrb[44].mxu1  ;;  %v4122_v42 = vld [vmem:[%s4551_s2 + $0x168] sm:$0xff]  }
 0x175   :  { %v872_v44 = vmax.f32 %v866_v48, 0.0  ;;  %v798_v45 = vmax.f32 %v692_v26, %v787_v19  ;;  %v789_v46 = vpop.f32.mrb[45].mxu0  ;;  %v852_v28 = vpop.f32.mrb[45].mxu1  ;;  %v3994_v26 = vld [vmem:[%s4551_s2 + $0x118] sm:$0xff]   ;;  %4587 = vst [vmem:[#allocation3_spill] sm:$0xff] %v4122_v42 }
 0x176   :  { %v790_v15 = vpop.f32.mrb[46].mxu0  ;;  %v853_v33 = vpop.f32.mrb[46].mxu1  ;;  %v885_v46 = vrot.slane %v3964_v34, 4  ;;  %v4056_v28 = vld [vmem:[%s4551_s2 + $0x150] sm:$0xff]  }
 0x177   :  { %v3986_v16 = vpack.c.bf16 %v872_v44, %v871_v41  ;;  %v799_v18 = vmax.f32 %v693_v31, %v790_v15  ;;  %v861_v20 = vmax.f32 %v798_v45, %v850_v47  ;;  %3134 = vmatpush3.bf16.msra.mxu0 %v3973_v36  ;;  %v792_v24 = vpop.f32.mrb[47].mxu0  ;;  %v855_v39 = vpop.f32.mrb[47].mxu1  ;;  %v892_v31 = vrot.slane %v3968_v29, 4  ;;  %v4033_v41 = vld [vmem:[%s4551_s2 + $0x148] sm:$0xff]   ;;  %v4042_v45 = vld [vmem:[%s4551_s2 + $0x190] sm:$0xff]  }
 0x178   :  { %3135 = vmatprep.subr.bf16.mxu0 %v3984_v43  ;;  %v4049_v47 = vld [vmem:[%s4551_s2 + $0x128] sm:$0xff]   ;;  %v4076_v24 = vld [vmem:[%s4551_s2 + $0x130] sm:$0xff]   ;;  %v4084_v39 = vld [vmem:[%s4551_s2 + $0x158] sm:$0xff]  }
 0x179   :  { %v867_v27 = vadd.f32 %v3952_v13, %v861_v20  ;;  %v862_v17 = vmax.f32 %v799_v18, %v853_v33  ;;  %1259 = vmatprep.mubr.bf16.mxu0 %v3986_v16  ;;  %v893_v30 = vrot.slane %v3986_v16, 4  ;;  %v4066_v20 = vld [vmem:[%s4551_s2 + $0x198] sm:$0xff]   ;;  %v4070_v33 = vsel %vm881_vm2, %v883_v25, %v885_v46  ;;  %v4091_v25 = vld [vmem:[%s4551_s2 + $0x1a0] sm:$0xff]   ;;  %v4147_v46 = vld [vmem:[%s4551_s2 + $0x170] sm:$0xff]  }
 0x17a   :  { %1260 = vmatmul.mubr.bf16.gmra.mrb[52].mxu0 %v3960_v21  ;;  %4591 = vst [vmem:[#allocation7_spill] sm:$0xff] %v4147_v46 }
 0x17b   :  { %v868_v38 = vadd.f32 %v3952_v13, %v862_v17  ;;  %3136 = vmatpush3.bf16.msra.mxu0 %v3984_v43  ;;  %3147 = vmatprep.mubr.bf16.mxu0 %v3960_v21  ;;  %v4011_v35 = vsel %vm881_vm2, %v892_v31, %v893_v30  ;;  %v4026_v13 = vld [vmem:[%s4551_s2 + $0x120] sm:$0xff]   ;;  %v873_v48 = vmax.f32 %v867_v27, 0.0  ;;  %v4097_v27 = vld [vmem:[%s4551_s2 + $0x138] sm:$0xff]   ;;  %v4110_v31 = vld [vmem:[%s4551_s2 + $0x1a8] sm:$0xff]  }
 0x17c   :  { %1300 = vmatprep.mubr.bf16.mxu1 %v4011_v35  ;;  %3137 = vmatprep.subr.bf16.mxu0 %v3994_v26  ;;  %v4103_v17 = vld [vmem:[%s4551_s2 + $0x160] sm:$0xff]  }
 0x17d   :  { %v874_v19 = vmax.f32 %v868_v38, 0.0  ;;  %1301 = vmatmul.mubr.bf16.vlgmr.msra.gmra.mrb[48].mxu1 %v4020_v40  ;;  %v4129_v38 = vld [vmem:[%s4551_s2 + $0x1c0] sm:$0xff]  }
 0x17e   :  { %2890 = vmatpush3.bf16.msra.mxu1 %v4005_v32  ;;  %4588 = vst [vmem:[#allocation4_spill] sm:$0xff] %v4129_v38 }
 0x17f   :  { %v4035_v44 = vpack.c.bf16 %v874_v19, %v873_v48  ;;  %3138 = vmatpush3.bf16.msra.mxu0 %v3994_v26  ;;  %2891 = vmatprep.subr.bf16.mxu1 %v4016_v23  ;;  %v4135_v48 = vld [vmem:[%s4551_s2 + $0x1b0] sm:$0xff]   ;;  %v4140_v19 = vld [vmem:[%s4551_s2 + $0x208] sm:$0xff]  }
 0x180   :  { %3139 = vmatprep.subr.bf16.mxu0 %v4026_v13  ;;  %4589 = vst [vmem:[#allocation5_spill] sm:$0xff] %v4135_v48  ;;  %4590 = vst [vmem:[#allocation6_spill] sm:$0xff] %v4140_v19 }
 0x181   :  { %4586 = vst [vmem:[#allocation2_spill] sm:$0xff] %v4035_v44  ;;  %v895_v15 = vrot.slane %v4035_v44, 4  ;;  %v4159_v44 = vld [vmem:[%s4551_s2 + $0x1b8] sm:$0xff]  }
 0x182   :  { %2892 = vmatpush3.bf16.msra.mxu1 %v4033_v41  ;;  %4592 = vst [vmem:[#allocation8_spill] sm:$0xff] %v4159_v44 }
 0x183   :  { %3140 = vmatpush3.bf16.msra.mxu0 %v4026_v13  ;;  %v4060_v18 = vsel %vm881_vm2, %v893_v30, %v895_v15  ;;  %2893 = vmatprep.subr.bf16.mxu1 %v4042_v45  ;;  %v4116_v30 = vld [vmem:[%s4551_s2 + $0x200] sm:$0xff]   ;;  %v4154_v15 = vld [vmem:[%s4551_s2 + $0x1c8] sm:$0xff]  }
 0x184   :  { %1308 = vmatprep.mubr.bf16.mxu1 %v4060_v18  ;;  %3141 = vmatprep.subr.bf16.mxu0 %v4049_v47 }
 0x185   :  { %1309 = vmatmul.mubr.bf16.gmra.mrb[52].mxu1 %v4070_v33 }
 0x186   :  { %2894 = vmatpush3.bf16.msra.mxu1 %v4056_v28  ;;  %1719 = vmatprep.mubr.bf16.mxu1 %v3968_v29 }
 0x187   :  { %3142 = vmatpush3.bf16.msra.mxu0 %v4049_v47  ;;  %2895 = vmatprep.subr.bf16.mxu1 %v4066_v20 }
 0x188   :  { %3143 = vmatprep.subr.bf16.mxu0 %v4076_v24 }
 0x18a   :  { %2896 = vmatpush3.bf16.msra.mxu1 %v4084_v39 }
 0x18b   :  { %3144 = vmatpush3.bf16.msra.mxu0 %v4076_v24  ;;  %2897 = vmatprep.subr.bf16.mxu1 %v4091_v25 }
 0x18c   :  { %3145 = vmatprep.subr.bf16.mxu0 %v4097_v27 }
 0x18e   :  { %2898 = vmatpush3.bf16.msra.mxu1 %v4103_v17 }
 0x18f   :  { %3146 = vmatpush3.bf16.msra.mxu0 %v4097_v27  ;;  %2899 = vmatprep.subr.bf16.mxu1 %v4110_v31 }
 0x190   :  { %2917 = vmatprep.subr.bf16.mxu0 %v4116_v30 }
 0x192   :  { %3148 = vmatmul.mubr.bf16.vlgmr.msra.gmra.mrb[56].mxu0 %v3964_v34  ;;  %2900 = vmatpush3.bf16.msra.mxu1 %v4122_v42  ;;  %v4172_v42 = vld [vmem:[%s4551_s2 + $0x178] sm:$0xff]  }
 0x193   :  { %2918 = vmatpush3.bf16.msra.mxu0 %v4129_v38  ;;  %1768 = vmatprep.mubr.bf16.mxu0 %v4011_v35  ;;  %v4166_v38 = vld [vmem:[%s4551_s2 + $0x210] sm:$0xff]   ;;  %4594 = vst [vmem:[#allocation10_spill] sm:$0xff] %v4172_v42 }
 0x194   :  { %2901 = vmatprep.subr.bf16.mxu1 %v4135_v48  ;;  %2919 = vmatprep.subr.bf16.mxu0 %v4140_v19  ;;  %4593 = vst [vmem:[#allocation9_spill] sm:$0xff] %v4166_v38  ;;  %v4179_v19 = vld [vmem:[%s4551_s2 + $0x1d0] sm:$0xff]   ;;  %v4184_v48 = vld [vmem:[%s4551_s2 + $0x240] sm:$0xff]  }
 0x195   :  { %4595 = vst [vmem:[#allocation11_spill] sm:$0xff] %v4179_v19 }
 0x196   :  { %2902 = vmatpush3.bf16.msra.mxu1 %v4147_v46  ;;  %v4190_v46 = vld [vmem:[%s4551_s2 + $0x218] sm:$0xff]  }
 0x197   :  { %2920 = vmatpush3.bf16.msra.mxu0 %v4154_v15  ;;  %2903 = vmatprep.subr.bf16.mxu1 %v4159_v44  ;;  %4596 = vst [vmem:[#allocation12_spill] sm:$0xff] %v4190_v46  ;;  %v4198_v44 = vld [vmem:[%s4551_s2 + $0x1d8] sm:$0xff]  }
 0x198   :  { %2921 = vmatprep.subr.bf16.mxu0 %v4166_v38  ;;  %4597 = vst [vmem:[#allocation13_spill] sm:$0xff] %v4198_v44  ;;  %v4203_v38 = vld [vmem:[%s4551_s2 + $0x248] sm:$0xff]  }
 0x199   :  { %4598 = vst [vmem:[#allocation14_spill] sm:$0xff] %v4203_v38 }
 0x19a   :  { %2904 = vmatpush3.bf16.msra.mxu1 %v4172_v42  ;;  %v4209_v42 = vld [vmem:[%s4551_s2 + $0x220] sm:$0xff]  }
 0x19b   :  { %2922 = vmatpush3.bf16.msra.mxu0 %v4179_v19  ;;  %3151 = vmatprep.subr.bf16.mxu1 %v4184_v48  ;;  %4599 = vst [vmem:[#allocation15_spill] sm:$0xff] %v4209_v42  ;;  %v4219_v19 = vld [vmem:[%s4551_s2 + $0x1e0] sm:$0xff]  }
 0x19c   :  { %2923 = vmatprep.subr.bf16.mxu0 %v4190_v46  ;;  %4600 = vst [vmem:[#allocation16_spill] sm:$0xff] %v4219_v19  ;;  %v4224_v46 = vld [vmem:[%s4551_s2 + $0x250] sm:$0xff]  }
 0x19d   :  { %1720 = vmatmul.mubr.bf16.vlgmr.msra.gmra.mrb[56].mxu1 %v3956_v37  ;;  %4601 = vst [vmem:[#allocation17_spill] sm:$0xff] %v4224_v46  ;;  %v4230_v37 = vld [vmem:[%s4551_s2 + $0x228] sm:$0xff]  }
 0x19e   :  { %1727 = vmatprep.mubr.bf16.mxu1 %v3986_v16  ;;  %3152 = vmatpush3.bf16.msra.mxu1 %v4184_v48  ;;  %4602 = vst [vmem:[#allocation18_spill] sm:$0xff] %v4230_v37 }
 0x19f   :  { %2924 = vmatpush3.bf16.msra.mxu0 %v4198_v44  ;;  %3153 = vmatprep.subr.bf16.mxu1 %v4203_v38  ;;  %v4238_v44 = vld [vmem:[%s4551_s2 + $0x1e8] sm:$0xff]  }
 0x1a0   :  { %2925 = vmatprep.subr.bf16.mxu0 %v4209_v42  ;;  %4603 = vst [vmem:[#allocation19_spill] sm:$0xff] %v4238_v44  ;;  %v4243_v42 = vld [vmem:[%s4551_s2 + $0x258] sm:$0xff]  }
 0x1a1   :  { %4604 = vst [vmem:[#allocation20_spill] sm:$0xff] %v4243_v42 }
 0x1a2   :  { %3154 = vmatpush3.bf16.msra.mxu1 %v4203_v38  ;;  %v4249_v38 = vld [vmem:[%s4551_s2 + $0x230] sm:$0xff]  }
 0x1a3   :  { %2926 = vmatpush3.bf16.msra.mxu0 %v4219_v19  ;;  %3155 = vmatprep.subr.bf16.mxu1 %v4224_v46  ;;  %4605 = vst [vmem:[#allocation21_spill] sm:$0xff] %v4249_v38  ;;  %v4259_v19 = vld [vmem:[%s4551_s2 + $0x1f0] sm:$0xff]  }
 0x1a4   :  { %2927 = vmatprep.subr.bf16.mxu0 %v4230_v37  ;;  %4606 = vst [vmem:[#allocation22_spill] sm:$0xff] %v4259_v19  ;;  %v4264_v37 = vld [vmem:[%s4551_s2 + $0x260] sm:$0xff]  }
 0x1a5   :  { %1728 = vmatmul.mubr.bf16.gmra.mrb[60].mxu1 %v3960_v21 }
 0x1a6   :  { %3156 = vmatpush3.bf16.msra.mxu1 %v4224_v46  ;;  %3167 = vmatprep.mubr.bf16.mxu1 %v3960_v21  ;;  %v4270_v46 = vld [vmem:[%s4551_s2 + $0x238] sm:$0xff]  }
 0x1a7   :  { %2928 = vmatpush3.bf16.msra.mxu0 %v4238_v44  ;;  %3157 = vmatprep.subr.bf16.mxu1 %v4243_v42  ;;  %4607 = vst [vmem:[#allocation23_spill] sm:$0xff] %v4270_v46  ;;  %v4278_v44 = vld [vmem:[%s4551_s2 + $0x1f8] sm:$0xff]  }
 0x1a8   :  { %2929 = vmatprep.subr.bf16.mxu0 %v4249_v38  ;;  %4608 = vst [vmem:[#allocation24_spill] sm:$0xff] %v4278_v44  ;;  %v4283_v38 = vld [vmem:[%s4551_s2 + $0x268] sm:$0xff]  }
 0x1a9   :  { %4609 = vst [vmem:[#allocation25_spill] sm:$0xff] %v4283_v38 }
 0x1aa   :  { %3158 = vmatpush3.bf16.msra.mxu1 %v4243_v42  ;;  %v4295_v42 = vld [vmem:[%s4551_s2 + $0x270] sm:$0xff]  }
 0x1ab   :  { %2930 = vmatpush3.bf16.msra.mxu0 %v4259_v19  ;;  %3159 = vmatprep.subr.bf16.mxu1 %v4264_v37  ;;  %v3382_v19 = vld [vmem:[%s4551_s2 + $0x40] sm:$0xff]  }
 0x1ac   :  { %2931 = vmatprep.subr.bf16.mxu0 %v4270_v46  ;;  %v3384_v46 = vld [vmem:[%s4551_s2 + $0x48] sm:$0xff]  }
 0x1ae   :  { %3160 = vmatpush3.bf16.msra.mxu1 %v4264_v37 }
 0x1af   :  { %2932 = vmatpush3.bf16.msra.mxu0 %v4278_v44  ;;  %3161 = vmatprep.subr.bf16.mxu1 %v4283_v38  ;;  %v3383_v44 = vld [vmem:[%s4551_s2] sm:$0xff]  }
 0x1b0   :  { %2955 = vmatprep.subr.bf16.mxu0 %v3382_v19  ;;  %v4306_v19 = vld [vmem:[%s4551_s2 + $0x278] sm:$0xff]  }
 0x1b2   :  { %1769 = vmatmul.mubr.bf16.vlgmr.msra.gmra.mrb[60].mxu0 %v4020_v40  ;;  %3162 = vmatpush3.bf16.msra.mxu1 %v4283_v38  ;;  %v3385_v38 = vld [vmem:[%s4551_s2 + $0x8] sm:$0xff]  }
 0x1b3   :  { %1776 = vmatprep.mubr.bf16.mxu0 %v4060_v18  ;;  %2956 = vmatpush3.bf16.msra.mxu0 %v3383_v44 }
 0x1b4   :  { %3163 = vmatprep.subr.bf16.mxu1 %v4295_v42  ;;  %2957 = vmatprep.subr.bf16.mxu0 %v3384_v46  ;;  %v3353_v46 = vld [vmem:[%s4553_s3 + $0x88] sm:$0xff]  }
 0x1b6   :  { %3164 = vmatpush3.bf16.msra.mxu1 %v4295_v42 }
 0x1b7   :  { %2958 = vmatpush3.bf16.msra.mxu0 %v3385_v38  ;;  %3165 = vmatprep.subr.bf16.mxu1 %v4306_v19  ;;  %v3352_v38 = vld [vmem:[%s4553_s3 + $0xc8] sm:$0xff]  }
 0x1b8   :  { %2959 = vmatprep.subr.bf16.mxu0 %v3772_v49  ;;  %v4610_v49 = vld [vmem:[#allocation2_spill] sm:$0xff] }
 0x1ba   :  { %1777 = vmatmul.mubr.bf16.gmra.mrb[64].mxu0 %v4070_v33  ;;  %3166 = vmatpush3.bf16.msra.mxu1 %v4306_v19 }
 0x1bb   :  { %2960 = vmatpush3.bf16.msra.mxu0 %v3778_v50  ;;  %1870 = vmatprep.mubr.bf16.mxu0 %v4020_v40  ;;  %v4611_v50 = vld [vmem:[#allocation3_spill] sm:$0xff] }
 0x1bc   :  { %2983 = vmatprep.subr.bf16.mxu1 %v3784_v51  ;;  %2961 = vmatprep.subr.bf16.mxu0 %v3789_v52  ;;  %v4612_v51 = vld [vmem:[#allocation4_spill] sm:$0xff]  ;;  %v4613_v52 = vld [vmem:[#allocation5_spill] sm:$0xff] }
 0x1bd   :  { %3168 = vmatmul.mubr.bf16.vlgmr.msra.gmra.mrb[64].mxu1 %v3964_v34 }
 0x1be   :  { %2984 = vmatpush3.bf16.msra.mxu1 %v3794_v53  ;;  %1919 = vmatprep.mubr.bf16.mxu1 %v3960_v21  ;;  %v4614_v53 = vld [vmem:[#allocation6_spill] sm:$0xff] }
 0x1bf   :  { %2962 = vmatpush3.bf16.msra.mxu0 %v3799_v54  ;;  %2985 = vmatprep.subr.bf16.mxu1 %v3804_v55  ;;  %v4615_v54 = vld [vmem:[#allocation7_spill] sm:$0xff]  ;;  %v4616_v55 = vld [vmem:[#allocation8_spill] sm:$0xff] }
 0x1c0   :  { %2963 = vmatprep.subr.bf16.mxu0 %v3809_v56  ;;  %v4617_v56 = vld [vmem:[#allocation9_spill] sm:$0xff] }
 0x1c2   :  { %2986 = vmatpush3.bf16.msra.mxu1 %v3816_v57  ;;  %v4618_v57 = vld [vmem:[#allocation10_spill] sm:$0xff] }
 0x1c3   :  { %2964 = vmatpush3.bf16.msra.mxu0 %v3821_v58  ;;  %2987 = vmatprep.subr.bf16.mxu1 %v3832_v59  ;;  %v4619_v58 = vld [vmem:[#allocation11_spill] sm:$0xff]  ;;  %v4620_v59 = vld [vmem:[#allocation12_spill] sm:$0xff] }
 0x1c4   :  { %2965 = vmatprep.subr.bf16.mxu0 %v3837_v60  ;;  %v4621_v60 = vld [vmem:[#allocation13_spill] sm:$0xff] }
 0x1c6   :  { %2988 = vmatpush3.bf16.msra.mxu1 %v3842_v61  ;;  %v4622_v61 = vld [vmem:[#allocation14_spill] sm:$0xff] }
 0x1c7   :  { %2966 = vmatpush3.bf16.msra.mxu0 %v3848_v62  ;;  %2989 = vmatprep.subr.bf16.mxu1 %v3856_v63  ;;  %v4623_v62 = vld [vmem:[#allocation15_spill] sm:$0xff]  ;;  %v4624_v63 = vld [vmem:[#allocation16_spill] sm:$0xff] }
 0x1c8   :  { %2967 = vmatprep.subr.bf16.mxu0 %v3861_v0  ;;  %v4625_v0 = vld [vmem:[#allocation17_spill] sm:$0xff] }
 0x1ca   :  { %2990 = vmatpush3.bf16.msra.mxu1 %v3866_v1  ;;  %v4626_v1 = vld [vmem:[#allocation18_spill] sm:$0xff] }
 0x1cb   :  { %2968 = vmatpush3.bf16.msra.mxu0 %v3872_v2  ;;  %2991 = vmatprep.subr.bf16.mxu1 %v3880_v3  ;;  %v4627_v2 = vld [vmem:[#allocation19_spill] sm:$0xff]  ;;  %v4628_v3 = vld [vmem:[#allocation20_spill] sm:$0xff] }
 0x1cc   :  { %2969 = vmatprep.subr.bf16.mxu0 %v3885_v4  ;;  %v4629_v4 = vld [vmem:[#allocation21_spill] sm:$0xff] }
 0x1ce   :  { %2992 = vmatpush3.bf16.msra.mxu1 %v3890_v5  ;;  %v4630_v5 = vld [vmem:[#allocation22_spill] sm:$0xff] }
 0x1cf   :  { %2970 = vmatpush3.bf16.msra.mxu0 %v3896_v6  ;;  %2993 = vmatprep.subr.bf16.mxu1 %v3904_v7  ;;  %v4631_v6 = vld [vmem:[#allocation23_spill] sm:$0xff]  ;;  %v4632_v7 = vld [vmem:[#allocation24_spill] sm:$0xff] }
 0x1d0   :  { %3171 = vmatprep.subr.bf16.mxu0 %v3914_v9 }
 0x1d2   :  { %1871 = vmatmul.mubr.bf16.vlgmr.msra.gmra.mrb[68].mxu0 %v3968_v29  ;;  %2994 = vmatpush3.bf16.msra.mxu1 %v3909_v8  ;;  %v4633_v8 = vld [vmem:[#allocation25_spill] sm:$0xff] }
 0x1d3   :  { %1878 = vmatprep.mubr.bf16.mxu0 %v4070_v33  ;;  %3172 = vmatpush3.bf16.msra.mxu0 %v3914_v9 }
 0x1d4   :  { %2995 = vmatprep.subr.bf16.mxu1 %v3922_v10  ;;  %3173 = vmatprep.subr.bf16.mxu0 %v3973_v36 }
 0x1d6   :  { %2996 = vmatpush3.bf16.msra.mxu1 %v3927_v11 }
 0x1d7   :  { %3174 = vmatpush3.bf16.msra.mxu0 %v3973_v36  ;;  %2997 = vmatprep.subr.bf16.mxu1 %v3934_v12 }
 0x1d8   :  { %3175 = vmatprep.subr.bf16.mxu0 %v3984_v43 }
 0x1da   :  { %1879 = vmatmul.mubr.bf16.gmra.mrb[72].mxu0 %v3986_v16  ;;  %2998 = vmatpush3.bf16.msra.mxu1 %v3939_v14 }
 0x1db   :  { %3176 = vmatpush3.bf16.msra.mxu0 %v3984_v43  ;;  %3187 = vmatprep.mubr.bf16.mxu0 %v3986_v16 }
 0x1dc   :  { %3021 = vmatprep.subr.bf16.mxu1 %v3946_v22  ;;  %3177 = vmatprep.subr.bf16.mxu0 %v3994_v26 }
 0x1dd   :  { %1920 = vmatmul.mubr.bf16.vlgmr.msra.gmra.mrb[68].mxu1 %v4011_v35 }
 0x1de   :  { %1927 = vmatprep.mubr.bf16.mxu1 %v3964_v34  ;;  %3022 = vmatpush3.bf16.msra.mxu1 %v4005_v32 }
 0x1df   :  { %3178 = vmatpush3.bf16.msra.mxu0 %v3994_v26  ;;  %3023 = vmatprep.subr.bf16.mxu1 %v4016_v23 }
 0x1e0   :  { %3179 = vmatprep.subr.bf16.mxu0 %v4026_v13 }
 0x1e2   :  { %3024 = vmatpush3.bf16.msra.mxu1 %v4033_v41 }
 0x1e3   :  { %3180 = vmatpush3.bf16.msra.mxu0 %v4026_v13  ;;  %3025 = vmatprep.subr.bf16.mxu1 %v4042_v45 }
 0x1e4   :  { %3181 = vmatprep.subr.bf16.mxu0 %v4049_v47 }
 0x1e5   :  { %1928 = vmatmul.mubr.bf16.gmra.mrb[72].mxu1 %v4060_v18 }
 0x1e6   :  { %3026 = vmatpush3.bf16.msra.mxu1 %v4056_v28  ;;  %2021 = vmatprep.mubr.bf16.mxu1 %v4020_v40 }
 0x1e7   :  { %3182 = vmatpush3.bf16.msra.mxu0 %v4049_v47  ;;  %3027 = vmatprep.subr.bf16.mxu1 %v4066_v20 }
 0x1e8   :  { %3183 = vmatprep.subr.bf16.mxu0 %v4076_v24 }
 0x1ea   :  { %3028 = vmatpush3.bf16.msra.mxu1 %v4084_v39  ;;  %v3346_v39 = vld [vmem:[%s4553_s3 + $0x40] sm:$0xff]  }
 0x1eb   :  { %3184 = vmatpush3.bf16.msra.mxu0 %v4076_v24  ;;  %3029 = vmatprep.subr.bf16.mxu1 %v4091_v25 }
 0x1ec   :  { %3185 = vmatprep.subr.bf16.mxu0 %v4097_v27 }
 0x1ee   :  { %3030 = vmatpush3.bf16.msra.mxu1 %v4103_v17  ;;  %v3348_v17 = vld [vmem:[%s4553_s3 + $0xc0] sm:$0xff]  }
 0x1ef   :  { %3186 = vmatpush3.bf16.msra.mxu0 %v4097_v27  ;;  %3031 = vmatprep.subr.bf16.mxu1 %v4110_v31  ;;  %v3347_v27 = vld [vmem:[%s4553_s3] sm:$0xff]  }
 0x1f0   :  { %3049 = vmatprep.subr.bf16.mxu0 %v4116_v30  ;;  %v3349_v31 = vld [vmem:[%s4553_s3 + $0x80] sm:$0xff]   ;;  %v3350_v30 = vld [vmem:[%s4553_s3 + $0x48] sm:$0xff]  }
 0x1f2   :  { %3188 = vmatmul.mubr.bf16.vlgmr.msra.gmra.mrb[76].mxu0 %v4610_v49  ;;  %3032 = vmatpush3.bf16.msra.mxu1 %v4611_v50  ;;  %v3354_v50 = vld [vmem:[%s4553_s3 + $0x50] sm:$0xff]  }
 0x1f3   :  { %3050 = vmatpush3.bf16.msra.mxu0 %v4612_v51  ;;  %2070 = vmatprep.mubr.bf16.mxu0 %v3960_v21 }
 0x1f4   :  { %3033 = vmatprep.subr.bf16.mxu1 %v4613_v52  ;;  %3051 = vmatprep.subr.bf16.mxu0 %v4614_v53  ;;  %v3355_v53 = vld [vmem:[%s4553_s3 + $0x10] sm:$0xff]  }
 0x1f6   :  { %3034 = vmatpush3.bf16.msra.mxu1 %v4615_v54  ;;  %v3356_v54 = vld [vmem:[%s4553_s3 + $0xd0] sm:$0xff]  }
 0x1f7   :  { %3052 = vmatpush3.bf16.msra.mxu0 %v4154_v15  ;;  %3035 = vmatprep.subr.bf16.mxu1 %v4616_v55 }
 0x1f8   :  { %3053 = vmatprep.subr.bf16.mxu0 %v4617_v56  ;;  %v3357_v56 = vld [vmem:[%s4553_s3 + $0x90] sm:$0xff]  }
 0x1fa   :  { %3036 = vmatpush3.bf16.msra.mxu1 %v4618_v57  ;;  %v3358_v57 = vld [vmem:[%s4553_s3 + $0x58] sm:$0xff]  }
 0x1fb   :  { %3054 = vmatpush3.bf16.msra.mxu0 %v4619_v58  ;;  %3191 = vmatprep.subr.bf16.mxu1 %v4184_v48  ;;  %v3359_v58 = vld [vmem:[%s4553_s3 + $0x18] sm:$0xff]  }
 0x1fc   :  { %3055 = vmatprep.subr.bf16.mxu0 %v4620_v59  ;;  %v3360_v59 = vld [vmem:[%s4553_s3 + $0xd8] sm:$0xff]  }
 0x1fd   :  { %2022 = vmatmul.mubr.bf16.vlgmr.msra.gmra.mrb[76].mxu1 %v3968_v29 }
 0x1fe   :  { %2029 = vmatprep.mubr.bf16.mxu1 %v4070_v33  ;;  %3192 = vmatpush3.bf16.msra.mxu1 %v4184_v48 }
 0x1ff   :  { %3056 = vmatpush3.bf16.msra.mxu0 %v4621_v60  ;;  %3193 = vmatprep.subr.bf16.mxu1 %v4622_v61  ;;  %v3361_v60 = vld [vmem:[%s4553_s3 + $0x98] sm:$0xff]  }
 0x200   :  { %3057 = vmatprep.subr.bf16.mxu0 %v4623_v62 }
 0x202   :  { %3194 = vmatpush3.bf16.msra.mxu1 %v4622_v61  ;;  %v3362_v61 = vld [vmem:[%s4553_s3 + $0x60] sm:$0xff]  }
 0x203   :  { %3058 = vmatpush3.bf16.msra.mxu0 %v4624_v63  ;;  %3195 = vmatprep.subr.bf16.mxu1 %v4625_v0  ;;  %v3363_v63 = vld [vmem:[%s4553_s3 + $0x20] sm:$0xff]  }
 0x204   :  { %3059 = vmatprep.subr.bf16.mxu0 %v4626_v1 }
 0x205   :  { %2030 = vmatmul.mubr.bf16.gmra.mrb[80].mxu1 %v3986_v16 }
 0x206   :  { %3196 = vmatpush3.bf16.msra.mxu1 %v4625_v0  ;;  %3207 = vmatprep.mubr.bf16.mxu1 %v3986_v16  ;;  %v3364_v0 = vld [vmem:[%s4553_s3 + $0xe0] sm:$0xff]  }
 0x207   :  { %3060 = vmatpush3.bf16.msra.mxu0 %v4627_v2  ;;  %3197 = vmatprep.subr.bf16.mxu1 %v4628_v3  ;;  %v3365_v2 = vld [vmem:[%s4553_s3 + $0xa0] sm:$0xff]  }
 0x208   :  { %3061 = vmatprep.subr.bf16.mxu0 %v4629_v4 }
 0x20a   :  { %3198 = vmatpush3.bf16.msra.mxu1 %v4628_v3 }
 0x20b   :  { %3062 = vmatpush3.bf16.msra.mxu0 %v4630_v5  ;;  %3199 = vmatprep.subr.bf16.mxu1 %v4264_v37 }
 0x20c   :  { %3063 = vmatprep.subr.bf16.mxu0 %v4631_v6  ;;  %v3366_v6 = vld [vmem:[%s4553_s3 + $0x68] sm:$0xff]  }
 0x20e   :  { %3200 = vmatpush3.bf16.msra.mxu1 %v4264_v37 }
 0x20f   :  { %3064 = vmatpush3.bf16.msra.mxu0 %v4632_v7  ;;  %3201 = vmatprep.subr.bf16.mxu1 %v4633_v8 }
 0x210   :  { %3087 = vmatprep.subr.bf16.mxu0 %v3346_v39 }
 0x212   :  { %2071 = vmatmul.mubr.bf16.vlgmr.msra.gmra.mrb[80].mxu0 %v4011_v35  ;;  %3202 = vmatpush3.bf16.msra.mxu1 %v4633_v8  ;;  %v3367_v8 = vld [vmem:[%s4553_s3 + $0x28] sm:$0xff]  }
 0x213   :  { %2078 = vmatprep.mubr.bf16.mxu0 %v3964_v34  ;;  %3203 = vmatprep.subr.bf16.mxu1 %v4295_v42 }
 0x214   :  { %3088 = vmatpush3.bf16.msra.mxu0 %v3347_v27 }
 0x215   :  { %3089 = vmatprep.subr.bf16.mxu0 %v3350_v30 }
 0x216   :  { %3204 = vmatpush3.bf16.msra.mxu1 %v4295_v42  ;;  %v3351_v42 = vld [vmem:[%s4553_s3 + $0x8] sm:$0xff]  }
 0x217   :  { %3205 = vmatprep.subr.bf16.mxu1 %v4306_v19 }
 0x218   :  { %3090 = vmatpush3.bf16.msra.mxu0 %v3351_v42 }
 0x219   :  { %3091 = vmatprep.subr.bf16.mxu0 %v3354_v50 }
 0x21a   :  { %2079 = vmatmul.mubr.bf16.gmra.mrb[84].mxu0 %v4060_v18  ;;  %3206 = vmatpush3.bf16.msra.mxu1 %v4306_v19 }
 0x21b   :  { %3109 = vmatprep.subr.bf16.mxu1 %v3348_v17 }
 0x21c   :  { %3092 = vmatpush3.bf16.msra.mxu0 %v3355_v53 }
 0x21d   :  { %3208 = vmatmul.mubr.bf16.vlgmr.msra.gmra.mrb[84].mxu1 %v4610_v49  ;;  %3093 = vmatprep.subr.bf16.mxu0 %v3358_v57 }
 0x21e   :  { %3110 = vmatpush3.bf16.msra.mxu1 %v3349_v31 }
 0x21f   :  { %3111 = vmatprep.subr.bf16.mxu1 %v3352_v38 }
 0x220   :  { %3094 = vmatpush3.bf16.msra.mxu0 %v3359_v58 }
 0x221   :  { %3095 = vmatprep.subr.bf16.mxu0 %v3362_v61 }
 0x222   :  { %3112 = vmatpush3.bf16.msra.mxu1 %v3353_v46 }
 0x223   :  { %3113 = vmatprep.subr.bf16.mxu1 %v3356_v54 }
 0x224   :  { %3096 = vmatpush3.bf16.msra.mxu0 %v3363_v63 }
 0x225   :  { %3097 = vmatprep.subr.bf16.mxu0 %v3366_v6 }
 0x226   :  { %3114 = vmatpush3.bf16.msra.mxu1 %v3357_v56 }
 0x227   :  { %3115 = vmatprep.subr.bf16.mxu1 %v3360_v59 }
 0x228   :  { %3098 = vmatpush3.bf16.msra.mxu0 %v3367_v8 }
 0x22a   :  { %3116 = vmatpush3.bf16.msra.mxu1 %v3361_v60 }
 0x22b   :  { %3117 = vmatprep.subr.bf16.mxu1 %v3364_v0 }
 0x22e   :  { %3118 = vmatpush3.bf16.msra.mxu1 %v3365_v2 }
 0x245   :  { %v2839_v9 = vpop.f32.mrb[48].mxu0 }
 0x246   :  { %v2840_v10 = vpop.f32.mrb[49].mxu0 }
 0x247   :  { %v2841_v11 = vadd.f32 %v2840_v10, %v2839_v9  ;;  %v2842_v12 = vpop.f32.mrb[50].mxu0  ;;  %v3368_v9 = vld [vmem:[%s4553_s3 + $0xe8] sm:$0xff]  }
 0x248   :  { %v2843_v14 = vpop.f32.mrb[51].mxu0  ;;  %v3369_v10 = vld [vmem:[%s4553_s3 + $0xa8] sm:$0xff]   ;;  %3119 = vmatprep.subr.bf16.mxu1 %v3368_v9 }
 0x249   :  { %v2844_v22 = vadd.f32 %v2843_v14, %v2842_v12  ;;  %3120 = vmatpush3.bf16.msra.mxu1 %v3369_v10  ;;  %v3371_v14 = vld [vmem:[%s4553_s3 + $0x30] sm:$0xff]  }
 0x24d   :  { %v2845_v21 = vpop.f32.mrb[52].mxu0 }
 0x24e   :  { %v2846_v34 = vpop.f32.mrb[53].mxu0 }
 0x24f   :  { %v2847_v29 = vadd.f32 %v2846_v34, %v2845_v21  ;;  %v2848_v36 = vpop.f32.mrb[54].mxu0  ;;  %v3373_v34 = vld [vmem:[%s4553_s3 + $0xb0] sm:$0xff]  }
 0x250   :  { %v2849_v43 = vpop.f32.mrb[55].mxu0  ;;  %v2867_v16 = vpop.f32.mrb[48].mxu1 }
 0x251   :  { %v2850_v26 = vadd.f32 %v2849_v43, %v2848_v36  ;;  %v2868_v32 = vpop.f32.mrb[49].mxu1 }
 0x252   :  { %v2869_v35 = vadd.f32 %v2868_v32, %v2867_v16  ;;  %v2870_v23 = vpop.f32.mrb[50].mxu1  ;;  %v3374_v16 = vld [vmem:[%s4553_s3 + $0x78] sm:$0xff]  }
 0x253   :  { %v2871_v40 = vpop.f32.mrb[51].mxu1  ;;  %v3375_v32 = vld [vmem:[%s4553_s3 + $0x38] sm:$0xff]  }
 0x254   :  { %v2872_v13 = vadd.f32 %v2871_v40, %v2870_v23  ;;  %v1303_v41 = vadd.f32 %v2869_v35, %v2841_v11  ;;  %v3370_v11 = vld [vmem:[%s4553_s3 + $0x70] sm:$0xff]   ;;  %v3376_v35 = vld [vmem:[%s4553_s3 + $0xf8] sm:$0xff]  }
 0x255   :  { %3099 = vmatprep.subr.bf16.mxu0 %v3370_v11  ;;  %v3377_v23 = vld [vmem:[%s4553_s3 + $0xb8] sm:$0xff]  }
 0x256   :  { %v1306_v44 = vadd.f32 %v2872_v13, %v2844_v22  ;;  %v3372_v22 = vld [vmem:[%s4553_s3 + $0xf0] sm:$0xff]   ;;  %3100 = vmatpush3.bf16.msra.mxu0 %v3371_v14 }
 0x257   :  { %3121 = vmatprep.subr.bf16.mxu1 %v3372_v22  ;;  %3101 = vmatprep.subr.bf16.mxu0 %v3374_v16 }
 0x258   :  { %v2873_v45 = vpop.f32.mrb[52].mxu1  ;;  %3122 = vmatpush3.bf16.msra.mxu1 %v3373_v34 }
 0x259   :  { %v2874_v47 = vpop.f32.mrb[53].mxu1  ;;  %3123 = vmatprep.subr.bf16.mxu1 %v3376_v35 }
 0x25a   :  { %v2875_v28 = vadd.f32 %v2874_v47, %v2873_v45  ;;  %v2876_v18 = vpop.f32.mrb[54].mxu1  ;;  %3102 = vmatpush3.bf16.msra.mxu0 %v3375_v32 }
 0x25b   :  { %v2877_v20 = vpop.f32.mrb[55].mxu1 }
 0x25c   :  { %v2878_v33 = vadd.f32 %v2877_v20, %v2876_v18  ;;  %v1311_v24 = vadd.f32 %v2875_v28, %v2847_v29  ;;  %3124 = vmatpush3.bf16.msra.mxu1 %v3377_v23 }
 0x25e   :  { %v1314_v25 = vadd.f32 %v2878_v33, %v2850_v26 }
 0x265   :  { %v3149_v48 = vpop.f32.mrb[56].mxu0 }
 0x266   :  { %v4456_v15 = vadd.f32 %v3149_v48, %v1311_v24  ;;  %v1351_v37 = vpop.f32.mrb[57].mxu0 }
 0x267   :  { %v4458_v19 = vadd.f32 %v1351_v37, %v1303_v41  ;;  %v3150_v49 = vpop.f32.mrb[58].mxu0 }
 0x268   :  { %v4463_v51 = vadd.f32 %v3150_v49, %v1314_v25  ;;  %v1354_v52 = vpop.f32.mrb[59].mxu0 }
 0x269   :  { %v4471_v55 = vadd.f32 %v1354_v52, %v1306_v44 }
 0x270   :  { %v2905_v62 = vpop.f32.mrb[56].mxu1 }
 0x271   :  { %v2906_v1 = vpop.f32.mrb[57].mxu1 }
 0x272   :  { %v2907_v3 = vadd.f32 %v2906_v1, %v2905_v62  ;;  %v2908_v4 = vpop.f32.mrb[58].mxu1 }
 0x273   :  { %v2909_v5 = vpop.f32.mrb[59].mxu1 }
 0x274   :  { %v2910_v7 = vadd.f32 %v2909_v5, %v2908_v4 }
 0x278   :  { %v2911_v12 = vpop.f32.mrb[60].mxu1 }
 0x279   :  { %v2912_v21 = vpop.f32.mrb[61].mxu1 }
 0x27a   :  { %v2913_v29 = vadd.f32 %v2912_v21, %v2911_v12  ;;  %v2914_v36 = vpop.f32.mrb[62].mxu1 }
 0x27b   :  { %v2915_v43 = vpop.f32.mrb[63].mxu1 }
 0x27c   :  { %v2916_v26 = vadd.f32 %v2915_v43, %v2914_v36 }
 0x285   :  { %v2933_v40 = vpop.f32.mrb[60].mxu0 }
 0x286   :  { %v2934_v13 = vpop.f32.mrb[61].mxu0 }
 0x287   :  { %v2935_v41 = vadd.f32 %v2934_v13, %v2933_v40  ;;  %v2936_v44 = vpop.f32.mrb[62].mxu0 }
 0x288   :  { %v2937_v45 = vpop.f32.mrb[63].mxu0 }
 0x289   :  { %v2938_v47 = vadd.f32 %v2937_v45, %v2936_v44  ;;  %v1771_v28 = vadd.f32 %v2935_v41, %v2907_v3 }
 0x28b   :  { %v1774_v18 = vadd.f32 %v2938_v47, %v2910_v7 }
 0x28d   :  { %v2939_v20 = vpop.f32.mrb[64].mxu0 }
 0x28e   :  { %v2940_v33 = vpop.f32.mrb[65].mxu0 }
 0x28f   :  { %v2941_v24 = vadd.f32 %v2940_v33, %v2939_v20  ;;  %v2942_v39 = vpop.f32.mrb[66].mxu0 }
 0x290   :  { %v2943_v25 = vpop.f32.mrb[67].mxu0  ;;  %v3169_v27 = vpop.f32.mrb[64].mxu1 }
 0x291   :  { %v2944_v17 = vadd.f32 %v2943_v25, %v2942_v39  ;;  %v1779_v31 = vadd.f32 %v2941_v24, %v2913_v29  ;;  %v1819_v30 = vpop.f32.mrb[65].mxu1 }
 0x292   :  { %v1820_v42 = vadd.f32 %v1819_v30, %v1771_v28  ;;  %v3170_v38 = vpop.f32.mrb[66].mxu1 }
 0x293   :  { %v1828_v48 = vadd.f32 %v3169_v27, %v1779_v31  ;;  %v1782_v46 = vadd.f32 %v2944_v17, %v2916_v26  ;;  %v1822_v37 = vpop.f32.mrb[67].mxu1 }
 0x294   :  { %v1834_v49 = vmax.f32 %v4458_v19, %v1820_v42  ;;  %v1823_v50 = vadd.f32 %v1822_v37, %v1774_v18 }
 0x295   :  { %v1836_v52 = vmax.f32 %v4456_v15, %v1828_v48  ;;  %v1831_v53 = vadd.f32 %v3170_v38, %v1782_v46 }
 0x296   :  { %v1835_v54 = vmax.f32 %v4471_v55, %v1823_v50 }
 0x297   :  { %v1837_v56 = vmax.f32 %v4463_v51, %v1831_v53 }
 0x2a5   :  { %v2971_v57 = vpop.f32.mrb[68].mxu0 }
 0x2a6   :  { %v2972_v58 = vpop.f32.mrb[69].mxu0 }
 0x2a7   :  { %v2973_v59 = vadd.f32 %v2972_v58, %v2971_v57  ;;  %v2974_v60 = vpop.f32.mrb[70].mxu0 }
 0x2a8   :  { %v2975_v61 = vpop.f32.mrb[71].mxu0 }
 0x2a9   :  { %v2976_v62 = vadd.f32 %v2975_v61, %v2974_v60 }
 0x2ad   :  { %v2977_v63 = vpop.f32.mrb[72].mxu0 }
 0x2ae   :  { %v2978_v0 = vpop.f32.mrb[73].mxu0 }
 0x2af   :  { %v2979_v1 = vadd.f32 %v2978_v0, %v2977_v63  ;;  %v2980_v2 = vpop.f32.mrb[74].mxu0 }
 0x2b0   :  { %v2981_v3 = vpop.f32.mrb[75].mxu0  ;;  %v2999_v19 = vpop.f32.mrb[68].mxu1 }
 0x2b1   :  { %v2982_v4 = vadd.f32 %v2981_v3, %v2980_v2  ;;  %v3000_v5 = vpop.f32.mrb[69].mxu1 }
 0x2b2   :  { %v3001_v15 = vadd.f32 %v3000_v5, %v2999_v19  ;;  %v3002_v6 = vpop.f32.mrb[70].mxu1 }
 0x2b3   :  { %v3003_v7 = vpop.f32.mrb[71].mxu1 }
 0x2b4   :  { %v3004_v55 = vadd.f32 %v3003_v7, %v3002_v6  ;;  %v1922_v8 = vadd.f32 %v3001_v15, %v2973_v59 }
 0x2b6   :  { %v1925_v51 = vadd.f32 %v3004_v55, %v2976_v62 }
 0x2b8   :  { %v3005_v9 = vpop.f32.mrb[72].mxu1 }
 0x2b9   :  { %v3006_v10 = vpop.f32.mrb[73].mxu1 }
 0x2ba   :  { %v3007_v11 = vadd.f32 %v3006_v10, %v3005_v9  ;;  %v3008_v12 = vpop.f32.mrb[74].mxu1 }
 0x2bb   :  { %v3009_v14 = vpop.f32.mrb[75].mxu1 }
 0x2bc   :  { %v3010_v22 = vadd.f32 %v3009_v14, %v3008_v12  ;;  %v1930_v21 = vadd.f32 %v3007_v11, %v2979_v1  ;;  %v2789_v1 = vld [vmem:[%s4554_s5] ss:$0 sm:$0xff] }
 0x2be   :  { %v1933_v34 = vadd.f32 %v3010_v22, %v2982_v4 }
 0x2c5   :  { %v3189_v29 = vpop.f32.mrb[76].mxu0 }
 0x2c6   :  { %v1979_v36 = vadd.f32 %v3189_v29, %v1930_v21  ;;  %v1970_v43 = vpop.f32.mrb[77].mxu0 }
 0x2c7   :  { %v1971_v16 = vadd.f32 %v1970_v43, %v1922_v8  ;;  %v3190_v26 = vpop.f32.mrb[78].mxu0 }
 0x2c8   :  { %v1987_v32 = vmax.f32 %v1836_v52, %v1979_v36  ;;  %v1982_v35 = vadd.f32 %v3190_v26, %v1933_v34  ;;  %v1973_v23 = vpop.f32.mrb[79].mxu0  ;;  %v2507_v36 = vlaneseq }
 0x2c9   :  { %v1985_v40 = vmax.f32 %v1834_v49, %v1971_v16  ;;  %v1974_v13 = vadd.f32 %v1973_v23, %v1925_v51  ;;  %v2790_v16 = vld [vmem:[%s4555_s6] ss:$0 sm:$0xff] }
 0x2ca   :  { %v1988_v41 = vmax.f32 %v1837_v56, %v1982_v35 }
 0x2cb   :  { %v1986_v44 = vmax.f32 %v1835_v54, %v1974_v13 }
 0x2d0   :  { %v3037_v45 = vpop.f32.mrb[76].mxu1 }
 0x2d1   :  { %v3038_v47 = vpop.f32.mrb[77].mxu1 }
 0x2d2   :  { %v3039_v28 = vadd.f32 %v3038_v47, %v3037_v45  ;;  %v3040_v18 = vpop.f32.mrb[78].mxu1  ;;  %v2508_v45 = vand.u32 127, %v2507_v36 }
 0x2d3   :  { %v3041_v20 = vpop.f32.mrb[79].mxu1 }
 0x2d4   :  { %v3042_v33 = vadd.f32 %v3041_v20, %v3040_v18  ;;  %vm2509_vm3 = vcmp.lt.s32.totalorder %v2508_v45, 50 }
 0x2d8   :  { %v3043_v24 = vpop.f32.mrb[80].mxu1 }
 0x2d9   :  { %v3044_v39 = vpop.f32.mrb[81].mxu1 }
 0x2da   :  { %v3045_v25 = vadd.f32 %v3044_v39, %v3043_v24  ;;  %v3046_v27 = vpop.f32.mrb[82].mxu1 }
 0x2db   :  { %v3047_v17 = vpop.f32.mrb[83].mxu1 }
 0x2dc   :  { %v3048_v31 = vadd.f32 %v3047_v17, %v3046_v27 }
 0x2e5   :  { %v3065_v30 = vpop.f32.mrb[80].mxu0 }
 0x2e6   :  { %v3066_v42 = vpop.f32.mrb[81].mxu0 }
 0x2e7   :  { %v3067_v38 = vadd.f32 %v3066_v42, %v3065_v30  ;;  %v3068_v48 = vpop.f32.mrb[82].mxu0 }
 0x2e8   :  { %v3069_v46 = vpop.f32.mrb[83].mxu0 }
 0x2e9   :  { %v3070_v37 = vadd.f32 %v3069_v46, %v3068_v48  ;;  %v2073_v49 = vadd.f32 %v3067_v38, %v3039_v28 }
 0x2eb   :  { %v2076_v50 = vadd.f32 %v3070_v37, %v3042_v33 }
 0x2ed   :  { %v3071_v52 = vpop.f32.mrb[84].mxu0 }
 0x2ee   :  { %v3072_v53 = vpop.f32.mrb[85].mxu0 }
 0x2ef   :  { %v3073_v54 = vadd.f32 %v3072_v53, %v3071_v52  ;;  %v3074_v56 = vpop.f32.mrb[86].mxu0 }
 0x2f0   :  { %v3075_v57 = vpop.f32.mrb[87].mxu0  ;;  %v3209_v58 = vpop.f32.mrb[84].mxu1 }
 0x2f1   :  { %v3076_v59 = vadd.f32 %v3075_v57, %v3074_v56  ;;  %v2081_v60 = vadd.f32 %v3073_v54, %v3045_v25  ;;  %v2121_v61 = vpop.f32.mrb[85].mxu1 }
 0x2f2   :  { %v2122_v62 = vadd.f32 %v2121_v61, %v2073_v49  ;;  %v3210_v63 = vpop.f32.mrb[86].mxu1 }
 0x2f3   :  { %v2130_v0 = vadd.f32 %v3209_v58, %v2081_v60  ;;  %v2084_v2 = vadd.f32 %v3076_v59, %v3048_v31  ;;  %v2124_v3 = vpop.f32.mrb[87].mxu1 }
 0x2f4   :  { %v2136_v19 = vmax.f32 %v1985_v40, %v2122_v62  ;;  %v2125_v4 = vadd.f32 %v2124_v3, %v2076_v50 }
 0x2f5   :  { %v2138_v5 = vmax.f32 %v1987_v32, %v2130_v0  ;;  %v2133_v15 = vadd.f32 %v3210_v63, %v2084_v2 }
 0x2f6   :  { %v2147_v6 = vadd.f32 %v2789_v1, %v2136_v19  ;;  %v2137_v7 = vmax.f32 %v1986_v44, %v2125_v4 }
 0x2f7   :  { %v2149_v55 = vadd.f32 %v2789_v1, %v2138_v5  ;;  %v2139_v8 = vmax.f32 %v1988_v41, %v2133_v15 }
 0x2f8   :  { %v2148_v51 = vadd.f32 %v2789_v1, %v2137_v7  ;;  %v2151_v10 = vmax.f32 %v2147_v6, 0.0 }
 0x2f9   :  { %v2150_v9 = vadd.f32 %v2789_v1, %v2139_v8  ;;  %v2153_v12 = vmax.f32 %v2149_v55, 0.0 }
 0x2fa   :  { %v2152_v11 = vmax.f32 %v2148_v51, 0.0 }
 0x2fb   :  { %v2154_v14 = vmax.f32 %v2150_v9, 0.0 }
 0x2fc   :  { %v2155_v22 = vpack.c.bf16 %v2152_v11, %v2151_v10 }
 0x2fd   :  { %v2156_v21 = vpack.c.bf16 %v2154_v14, %v2153_v12 }
 0x2fe   :  { %v2158_v34 = vrot.slane %v2155_v22, 4 }
 0x2ff   :  { %v2161_v29 = vrot.slane %v2156_v21, 4 }
 0x300   :  { %2458 = vmatprep.mubr.bf16.mxu0 %v2158_v34 }
 0x301   :  { %2459 = vmatmul.mubr.bf16.vlgmr.msra.gmra.mrb[88].mxu0 %v2155_v22  ;;  %2498 = vmatprep.mubr.bf16.mxu1 %v2161_v29 }
 0x302   :  { %2499 = vmatmul.mubr.bf16.vlgmr.msra.gmra.mrb[88].mxu1 %v2156_v21 }
 0x3d4   :  { %v3103_v43 = vpop.f32.mrb[88].mxu0 }
 0x3d5   :  { %v3104_v26 = vpop.f32.mrb[89].mxu0  ;;  %v3125_v32 = vpop.f32.mrb[88].mxu1 }
 0x3d6   :  { %v3105_v35 = vadd.f32 %v3104_v26, %v3103_v43  ;;  %v3106_v23 = vpop.f32.mrb[90].mxu0  ;;  %v3126_v40 = vpop.f32.mrb[89].mxu1 }
 0x3d7   :  { %v3127_v13 = vadd.f32 %v3126_v40, %v3125_v32  ;;  %v3107_v41 = vpop.f32.mrb[91].mxu0  ;;  %v3128_v44 = vpop.f32.mrb[90].mxu1 }
 0x3d8   :  { %v2461_v47 = vadd.f32 %v3105_v35, %v2790_v16  ;;  %v3129_v28 = vpop.f32.mrb[91].mxu1 }
 0x3da   :  { %v2501_v18 = vadd.f32 %v3127_v13, %v2461_v47 }
 0x3dc   :  { %v2506_v20 = vmax.f32 %v2501_v18, 0.0 }
 0x3de   :  { %v2510_v33 = vsel %vm2509_vm3, %v2506_v20, -1e+30 }
 0x3df   :  { %2511 = vmax.xlane.f32.xlu0 %v2510_v33 }
 0x46c   :  { %v2512_v24 = vpop.xlane.xlu0 %2511 }
 0x46d   :  { %v2513_v39 = vsub.f32 %v2510_v33, %v2512_v24 }
 0x46f   :  { %v2514_v25 = vmul.f32 1.442695, %v2513_v39 }
 0x471   :  { %3378 = vpow2.f32 %v2514_v25 }
 0x47b   :  { %v3379_v27 = vpop.eup %3378 }
 0x47c   :  { %2516 = vadd.xlane.f32.xlu0 %v3379_v27 }
 0x509   :  { %v2517_v17 = vpop.xlane.xlu0 %2516 }
 0x50a   :  { %3380 = vlog2.f32 %v2517_v17 }
 0x514   :  { %v3381_v31 = vpop.eup %3380 }
 0x515   :  { %v2519_v30 = vmul.f32 0.6931472, %v3381_v31 }
 0x517   :  { %v2520_v42 = vsub.f32 %v2513_v39, %v2519_v30 }
 0x519   :  { %2521 = vst [vmem:[%s4556_s7] sm:$0xff] %v2520_v42 }

</bundles_post_ra>
